<compile_context>
chip_gen: v7x
topology: tpu7x:2x2x1
jax: 0.10.0
libtpu: 0.0.40
codegen_flags: <defaults>
</compile_context>

<pallas_src>
import numpy as np
import jax
import jax.numpy as jnp
from jax.experimental import pallas as pl
from jax.experimental.pallas import tpu as pltpu

K = 3                                   # kernel_size (odd -> padding = K // 2 = 1)
PAD = K // 2
ENC_CFG = [(1, 4), (4, 8), (8, 16)]     # (Cin, Cout) per encoder residual block
DEC_CFG = [(16, 8), (8, 4)]             # per decoder residual block
TARGET_LEN = 1024                       # forward pads the output length to 1024

VPU_MAX_CONTRACT = 4                    # contractions <= this use unrolled VPU MACs

# ----------------------------- packed parameter layout -----------------------------
WCOLS = 3 * 16                          # widest contraction (3 taps x 16 channels)
BIAS_COL = WCOLS                        # bias lives in the last column
PACK_W = WCOLS + 1                      # 49 columns total


def _pad8(n):
    return ((n + 7) // 8) * 8


def _build_layout():
    units = []
    for i, (cin, cout) in enumerate(ENC_CFG):
        units += [(f"e{i}c1", cout, 3 * cin),       # Conv1d(cin, cout, 3)
                  (f"e{i}c2", cout, 3 * cout),      # Conv1d(cout, cout, 3)
                  (f"e{i}a", cout, cin)]            # Conv1d(cin, cout, 1)
    for i, (cin, cout) in enumerate(DEC_CFG):
        units += [(f"d{i}c1", 2 * cout, 2 * cin),   # ConvT(cin, cout, 3, s=2): both phases
                  (f"d{i}c2", cout, 3 * cout),      # ConvT(cout, cout, 3, s=1)
                  (f"d{i}a", cout, cin)]            # ConvT(cin, cout, 1, s=2)
    units += [("fc1", 2, 2 * 4)]                    # final ConvT(4, 1, 3, s=2): both phases
    layout, off = {}, 0
    for nm, rows, cols in units:
        layout[nm] = (off, rows, cols)
        off += _pad8(rows)
    return layout, off


LAYOUT, RTOT = _build_layout()


# ----------------------------------- kernel ----------------------------------------

def make_kernel(TB, L):
    N = TB * L

    # Dilation sets derived from the configs (no hard-wired {1,2,4,8}).
    n_enc, n_dec = len(ENC_CFG), len(DEC_CFG)
    enc_d = [1 << i for i in range(n_enc)]
    d0 = 1 << n_enc
    dec_d = [d0 >> i for i in range(n_dec)]
    d_fin = d0 >> n_dec
    mp_dils = sorted(set(enc_d) | set(dec_d) | {d // 2 for d in dec_d} | {d_fin})
    mn_dils = sorted(set(enc_d) | {d // 2 for d in dec_d})
    ph_dils = sorted(set(dec_d) | {d_fin})

    def load_w(wp_ref, nm):
        off, rows, cols = LAYOUT[nm]
        w = wp_ref[off:off + rows, 0:cols]
        b = wp_ref[off:off + rows, BIAS_COL:BIAS_COL + 1]
        return w, b

    def kernel(x_ref, wp_ref, o_ref):
        x = x_ref[0]                                          # (1, TB*L) f32

        # ---- masks hoisted: one iota, a handful of compares, reused everywhere ----
        t = jax.lax.broadcasted_iota(jnp.int32, (1, N), 1)
        tl = jax.lax.bitwise_and(t, L - 1)                    # per-sample local index
        mp = {d: (tl < (L - d)).astype(jnp.float32) for d in mp_dils}
        mn = {d: (tl >= d).astype(jnp.float32) for d in mn_dils}
        phb = {d: jax.lax.bitwise_and(tl, d - 1) == 0 for d in ph_dils}   # bool masks

        def shift(v, off, m):
            """y[:, t] = v[:, t + off] within each sample, 0 outside (flat batched)."""
            return pltpu.roll(v, shift=(-off) % N, axis=1) * m

        def mac(w, taps, out=None):
            """Unrolled VPU multiply-add: sum_j w[:, j:j+1] * taps[j]."""
            for j, row in enumerate(taps):
                p = w[:, j:j + 1] * row
                out = p if out is None else out + p
            return out

        def chmix(w, v):
            """(R, C) x (C, N) channel mixing.  VPU for tiny contractions, MXU else."""
            c = v.shape[0]
            if c <= VPU_MAX_CONTRACT:
                return mac(w, [v[j:j + 1, :] for j in range(c)])
            return jnp.dot(w, v, preferred_element_type=jnp.float32)

        def conv3(v, w, b, d):
            """K=3 conv at dilation d: im2col the 3 taps -> one matmul (or VPU MACs)."""
            cin = v.shape[0]
            left = shift(v, -d, mn[d])
            right = shift(v, d, mp[d])
            if 3 * cin <= VPU_MAX_CONTRACT:
                taps = ([left[j:j + 1, :] for j in range(cin)]
                        + [v[j:j + 1, :] for j in range(cin)]
                        + [right[j:j + 1, :] for j in range(cin)])
                return mac(w, taps) + b
            stacked = jnp.concatenate([left, v, right], axis=0)
            return jnp.dot(w, stacked, preferred_element_type=jnp.float32) + b

        h = x
        d = 1                                                  # current dilation
        # --------------------------------- encoder ---------------------------------
        for i, (_cin, cout) in enumerate(ENC_CFG):
            w1, b1 = load_w(wp_ref, f"e{i}c1")
            w2, b2 = load_w(wp_ref, f"e{i}c2")
            wa, ba = load_w(wp_ref, f"e{i}a")
            o = jnp.maximum(conv3(h, w1, b1, d), 0.0)
            o = conv3(o, w2, b2, d)
            h = jnp.maximum(o + (chmix(wa, h) + ba), 0.0)
            # MaxPool1d(2, 2): elementwise max; result lives at dilation 2d.
            h = jnp.maximum(h, shift(h, d, mp[d]))
            d *= 2
        # --------------------------------- decoder ---------------------------------
        for i, (_cin, cout) in enumerate(DEC_CFG):
            dp = d // 2
            wc, bc = load_w(wp_ref, f"d{i}c1")
            w2, b2 = load_w(wp_ref, f"d{i}c2")
            wa, ba = load_w(wp_ref, f"d{i}a")
            # ConvTranspose1d(cin, cout, 3, stride=2, pad=1, output_padding=1):
            # both output phases from a single (2*cout, 2*cin) matmul, then a vsel blend.
            st2 = jnp.concatenate([h, shift(h, d, mp[d])], axis=0)
            m = jnp.dot(wc, st2, preferred_element_type=jnp.float32) + bc
            even_ph = m[0:cout]
            odd_ph = pltpu.roll(m[cout:2 * cout], shift=dp, axis=1)   # place at +dp lanes
            u = jnp.where(phb[d], even_ph, odd_ph)                    # single select
            u = jnp.maximum(u, 0.0)
            u = conv3(u, w2, b2, dp)                                  # ConvT s=1 (taps flipped)
            # identity: ConvT(cin, cout, 1, stride=2, output_padding=1)
            idn = jnp.where(phb[d], chmix(wa, h), 0.0) + ba
            h = jnp.maximum(u + idn, 0.0)
            d = dp
        # ------------- final ConvTranspose1d(4, 1, 3, stride=2, out_pad=1) -------------
        wc, bc = load_w(wp_ref, "fc1")
        st2 = jnp.concatenate([h, shift(h, d, mp[d])], axis=0)        # d == d_fin here
        m = jnp.dot(wc, st2, preferred_element_type=jnp.float32) + bc
        y = jnp.where(phb[d], m[0:1], pltpu.roll(m[1:2], shift=d // 2, axis=1))  # (1, N)

        # one lane-dense, unmasked store of the full per-step output block
        o_ref[...] = y[None]

    return kernel


# ----------------------------------- wrapper ----------------------------------------

def autoencoder_forward(x, packed_params, *, target_lanes=16384):
    B, C, L = x.shape
    assert C == 1
    assert L >= 8 and (L & (L - 1)) == 0, "sequence length must be a power of two"
    assert L <= TARGET_LEN

    # ------------------ generation-aware grid / tile sizing ------------------
    try:
        kind = jax.devices()[0].device_kind.lower()
    except Exception:
        kind = ""
    is_v7 = ("v7" in kind) or ("7x" in kind)
    n_cores = 2 if is_v7 else 1            # v5e/v6e: one TensorCore per chip

    # Fill ~target_lanes lanes per grid step (amortizes per-step overhead and the
    # weight-slice loads); G is derived from that, not fixed.
    TB = max(1, min(B, max(1, target_lanes // L)))
    G = pl.cdiv(B, TB)
    if n_cores > 1 and B > 1:
        # keep the grid a multiple of the TensorCore count so both v7x cores get work
        G = max(G, n_cores)
        G = ((G + n_cores - 1) // n_cores) * n_cores
        TB = pl.cdiv(B, G)
    Bp = G * TB
    if Bp != B:
        x = jnp.pad(x, ((0, Bp - B), (0, 0), (0, 0)))
    N = TB * L
    xf = x.reshape(G, 1, N)

    # Explicit VMEM cap: peak live activations are ~hundreds of bytes/lane; keep a
    # generous margin but stay inside v7x's 64 MiB physical VMEM.
    vmem_limit = int(min(48 << 20, max(24 << 20, 768 * N + (2 << 20))))

    # On v7x shard the batch axis across the two TensorCores; elsewhere plain parallel.
    sem = pltpu.CORE_PARALLEL if (is_v7 and G % n_cores == 0) else "parallel"

    out = pl.pallas_call(
        make_kernel(TB, L),
        out_shape=jax.ShapeDtypeStruct((G, 1, N), jnp.float32),
        grid=(G,),
        in_specs=[
            pl.BlockSpec((1, 1, N), lambda g: (g, 0, 0)),        # flattened samples
            pl.BlockSpec((RTOT, PACK_W), lambda g: (0, 0)),      # packed weights+biases
        ],
        out_specs=pl.BlockSpec((1, 1, N), lambda g: (g, 0, 0)),  # lane-dense output
        compiler_params=pltpu.CompilerParams(
            dimension_semantics=(sem,),
            vmem_limit_bytes=vmem_limit),
    )(xf, packed_params)

    y = out.reshape(Bp, 1, L)[:B]
    if L != TARGET_LEN:                                          # pad once, in the wrapper
        y = jnp.pad(y, ((0, 0), (0, 0), (0, TARGET_LEN - L)))
    return y


# --------------------------- parameter init / packing -------------------------------

def init_torch_params(key):
    """Deterministic params in PyTorch layouts: Conv1d (Cout,Cin,K), ConvT1d (Cin,Cout,K)."""
    def conv_w(k, cout, cin, ksz):
        bound = 1.0 / np.sqrt(cin * ksz)
        kw, kb = jax.random.split(k)
        w = jax.random.uniform(kw, (cout, cin, ksz), jnp.float32, -bound, bound)
        b = jax.random.uniform(kb, (cout,), jnp.float32, -bound, bound)
        return w, b

    def convT_w(k, cin, cout, ksz):
        bound = 1.0 / np.sqrt(cout * ksz)
        kw, kb = jax.random.split(k)
        w = jax.random.uniform(kw, (cin, cout, ksz), jnp.float32, -bound, bound)
        b = jax.random.uniform(kb, (cout,), jnp.float32, -bound, bound)
        return w, b

    keys = iter(jax.random.split(key, 16))
    tp = {}
    for i, (cin, cout) in enumerate(ENC_CFG):
        tp[f"e{i}_w1"], tp[f"e{i}_b1"] = conv_w(next(keys), cout, cin, K)
        tp[f"e{i}_w2"], tp[f"e{i}_b2"] = conv_w(next(keys), cout, cout, K)
        tp[f"e{i}_wa"], tp[f"e{i}_ba"] = conv_w(next(keys), cout, cin, 1)
    for i, (cin, cout) in enumerate(DEC_CFG):
        tp[f"d{i}_w1"], tp[f"d{i}_b1"] = convT_w(next(keys), cin, cout, K)
        tp[f"d{i}_w2"], tp[f"d{i}_b2"] = convT_w(next(keys), cout, cout, K)
        tp[f"d{i}_wa"], tp[f"d{i}_ba"] = convT_w(next(keys), cin, cout, 1)
    tp["f_w"], tp["f_b"] = convT_w(next(keys), 4, 1, K)
    return tp


def pack_params(tp):
    """Pack every conv's weight (pre-flattened for the in-kernel im2col order) and bias
    into one (RTOT, 49) f32 array: weight in columns [0:cols], bias in column 48."""
    WP = np.zeros((RTOT, PACK_W), np.float32)

    def put(nm, w, b):
        off, rows, cols = LAYOUT[nm]
        assert w.shape == (rows, cols) and b.shape == (rows,)
        WP[off:off + rows, 0:cols] = w
        WP[off:off + rows, BIAS_COL] = b

    def conv_flat(w):                       # Conv1d (Cout,Cin,K) -> [W0 | W1 | W2]
        cout, cin, k = w.shape
        return np.transpose(w, (0, 2, 1)).reshape(cout, k * cin)

    def convT_flat(w):                      # ConvT1d s=1 (Cin,Cout,K) -> [W2 | W1 | W0]
        cin, cout, k = w.shape
        return np.transpose(w[:, :, ::-1], (1, 2, 0)).reshape(cout, k * cin)

    def convT_s2(w, b):                     # ConvT1d s=2: both output phases combined
        cin, cout, _ = w.shape
        w0, w1, w2 = w[:, :, 0].T, w[:, :, 1].T, w[:, :, 2].T
        wc = np.block([[w1, np.zeros((cout, cin), np.float32)], [w2, w0]])
        return wc.astype(np.float32), np.concatenate([b, b])

    tpn = {k: np.asarray(v, np.float32) for k, v in tp.items()}
    for i in range(len(ENC_CFG)):
        put(f"e{i}c1", conv_flat(tpn[f"e{i}_w1"]), tpn[f"e{i}_b1"])
        put(f"e{i}c2", conv_flat(tpn[f"e{i}_w2"]), tpn[f"e{i}_b2"])
        put(f"e{i}a", tpn[f"e{i}_wa"][:, :, 0], tpn[f"e{i}_ba"])
    for i in range(len(DEC_CFG)):
        wc, bc = convT_s2(tpn[f"d{i}_w1"], tpn[f"d{i}_b1"])
        put(f"d{i}c1", wc, bc)
        put(f"d{i}c2", convT_flat(tpn[f"d{i}_w2"]), tpn[f"d{i}_b2"])
        put(f"d{i}a", tpn[f"d{i}_wa"][:, :, 0].T, tpn[f"d{i}_ba"])
    wc, bc = convT_s2(tpn["f_w"], tpn["f_b"])
    put("fc1", wc, bc)
    return jnp.asarray(WP)


# ----------------------- numpy reference (PyTorch semantics) ------------------------

def np_conv1d(x, w, b, stride, pad):
    cin, L = x.shape
    cout, _, ksz = w.shape
    lout = (L + 2 * pad - ksz) // stride + 1
    xp = np.pad(x, ((0, 0), (pad, pad)))
    out = np.zeros((cout, lout), np.float32)
    for t in range(lout):
        win = xp[:, t * stride: t * stride + ksz]
        out[:, t] = np.tensordot(w, win, axes=([1, 2], [0, 1]))
    return out + b[:, None]


def np_convT1d(x, w, b, stride, pad, out_pad):
    cin, L = x.shape
    _, cout, ksz = w.shape
    lout = (L - 1) * stride - 2 * pad + ksz + out_pad
    out = np.zeros((cout, lout), np.float32)
    for s in range(L):
        for k in range(ksz):
            t = s * stride - pad + k
            if 0 <= t < lout:
                out[:, t] += np.tensordot(x[:, s], w[:, :, k], axes=([0], [0]))
    return out + b[:, None]


def np_forward(x, tp):
    tpn = {k: np.asarray(v, np.float32) for k, v in tp.items()}
    outs = []
    for xb in x:
        h = xb.astype(np.float32)
        for i in range(len(ENC_CFG)):
            o = np.maximum(np_conv1d(h, tpn[f"e{i}_w1"], tpn[f"e{i}_b1"], 1, PAD), 0)
            o = np_conv1d(o, tpn[f"e{i}_w2"], tpn[f"e{i}_b2"], 1, PAD)
            idn = np_conv1d(h, tpn[f"e{i}_wa"], tpn[f"e{i}_ba"], 1, 0)
            h = np.maximum(o + idn, 0)
            Cc, Lc = h.shape
            h = h.reshape(Cc, Lc // 2, 2).max(axis=-1)
        for i in range(len(DEC_CFG)):
            o = np.maximum(np_convT1d(h, tpn[f"d{i}_w1"], tpn[f"d{i}_b1"], 2, PAD, 1), 0)
            o = np_convT1d(o, tpn[f"d{i}_w2"], tpn[f"d{i}_b2"], 1, PAD, 0)
            idn = np_convT1d(h, tpn[f"d{i}_wa"], tpn[f"d{i}_ba"], 2, 0, 1)
            h = np.maximum(o + idn, 0)
        h = np_convT1d(h, tpn["f_w"], tpn["f_b"], 2, PAD, 1)
        outs.append(h)
    y = np.stack(outs)
    if y.shape[2] != TARGET_LEN:
        y = np.pad(y, ((0, 0), (0, 0), (0, TARGET_LEN - y.shape[2])))
    return y


# -------------------------------------- main ----------------------------------------

if __name__ == "__main__":
    key = jax.random.PRNGKey(0)
    kx, kp = jax.random.split(key)

    B, L = 4, 128
    x = jax.random.normal(kx, (B, 1, L), jnp.float32)

    tp = init_torch_params(kp)
    wp = pack_params(tp)

    y = jax.block_until_ready(autoencoder_forward(x, wp))
    assert y.shape == (B, 1, TARGET_LEN)

    y_ref = np_forward(np.asarray(x), tp)
    np.testing.assert_allclose(np.asarray(y), y_ref, rtol=1e-3, atol=1e-3)

    print("KERNEL_OK")
</pallas_src>

<mosaic_0001>
module attributes {stable_mosaic.version = 11 : i64} {
  func.func @kernel(%arg0: i32, %arg1: memref<1x1x512xf32, #tpu.memory_space<vmem>>, %arg2: memref<160x49xf32, #tpu.memory_space<vmem>>, %arg3: memref<1x1x512xf32, #tpu.memory_space<vmem>>) attributes {dimension_semantics = [#tpu.dimension_semantics<parallel>], iteration_bounds = array<i64: 1>, scalar_prefetch = 0 : i64, scratch_operands = 0 : i64, tpu.core_type = #tpu.core_type<tc>, window_params = [{transform_indices = @transform_0, window_bounds = array<i64: 1, 1, 512>}, {pipeline_mode = #tpu.pipeline_mode<synchronous>, transform_indices = @transform_1, window_bounds = array<i64: 160, 49>}, {transform_indices = @transform_2, window_bounds = array<i64: 1, 1, 512>}]} {
    %c0 = arith.constant 0 : index
    %c0_0 = arith.constant 0 : index
    %c0_1 = arith.constant 0 : index
    %0 = vector.load %arg1[%c0, %c0_0, %c0_1] : memref<1x1x512xf32, #tpu.memory_space<vmem>>, vector<1x1x512xf32>
    %1 = vector.shape_cast %0 : vector<1x1x512xf32> to vector<1x512xf32>
    %2 = tpu.iota {dimensions = array<i32: 1>} : vector<1x512xi32>
    %c127_i32 = arith.constant 127 : i32
    %3 = vector.broadcast %c127_i32 : i32 to vector<1x512xi32>
    %4 = arith.andi %2, %3 : vector<1x512xi32>
    %c127_i32_2 = arith.constant 127 : i32
    %5 = vector.broadcast %c127_i32_2 : i32 to vector<1x512xi32>
    %6 = arith.cmpi slt, %4, %5 : vector<1x512xi32>
    %7 = arith.extui %6 : vector<1x512xi1> to vector<1x512xi32>
    %8 = arith.sitofp %7 : vector<1x512xi32> to vector<1x512xf32>
    %c126_i32 = arith.constant 126 : i32
    %9 = vector.broadcast %c126_i32 : i32 to vector<1x512xi32>
    %10 = arith.cmpi slt, %4, %9 : vector<1x512xi32>
    %11 = arith.extui %10 : vector<1x512xi1> to vector<1x512xi32>
    %12 = arith.sitofp %11 : vector<1x512xi32> to vector<1x512xf32>
    %c124_i32 = arith.constant 124 : i32
    %13 = vector.broadcast %c124_i32 : i32 to vector<1x512xi32>
    %14 = arith.cmpi slt, %4, %13 : vector<1x512xi32>
    %15 = arith.extui %14 : vector<1x512xi1> to vector<1x512xi32>
    %16 = arith.sitofp %15 : vector<1x512xi32> to vector<1x512xf32>
    %c120_i32 = arith.constant 120 : i32
    %17 = vector.broadcast %c120_i32 : i32 to vector<1x512xi32>
    %18 = arith.cmpi slt, %4, %17 : vector<1x512xi32>
    %19 = arith.extui %18 : vector<1x512xi1> to vector<1x512xi32>
    %20 = arith.sitofp %19 : vector<1x512xi32> to vector<1x512xf32>
    %c1_i32 = arith.constant 1 : i32
    %21 = vector.broadcast %c1_i32 : i32 to vector<1x512xi32>
    %22 = arith.cmpi sge, %4, %21 : vector<1x512xi32>
    %23 = arith.extui %22 : vector<1x512xi1> to vector<1x512xi32>
    %24 = arith.sitofp %23 : vector<1x512xi32> to vector<1x512xf32>
    %c2_i32 = arith.constant 2 : i32
    %25 = vector.broadcast %c2_i32 : i32 to vector<1x512xi32>
    %26 = arith.cmpi sge, %4, %25 : vector<1x512xi32>
    %27 = arith.extui %26 : vector<1x512xi1> to vector<1x512xi32>
    %28 = arith.sitofp %27 : vector<1x512xi32> to vector<1x512xf32>
    %c4_i32 = arith.constant 4 : i32
    %29 = vector.broadcast %c4_i32 : i32 to vector<1x512xi32>
    %30 = arith.cmpi sge, %4, %29 : vector<1x512xi32>
    %31 = arith.extui %30 : vector<1x512xi1> to vector<1x512xi32>
    %32 = arith.sitofp %31 : vector<1x512xi32> to vector<1x512xf32>
    %c1_i32_3 = arith.constant 1 : i32
    %33 = vector.broadcast %c1_i32_3 : i32 to vector<1x512xi32>
    %34 = arith.andi %4, %33 : vector<1x512xi32>
    %c0_i32 = arith.constant 0 : i32
    %35 = vector.broadcast %c0_i32 : i32 to vector<1x512xi32>
    %36 = arith.cmpi eq, %34, %35 : vector<1x512xi32>
    %c3_i32 = arith.constant 3 : i32
    %37 = vector.broadcast %c3_i32 : i32 to vector<1x512xi32>
    %38 = arith.andi %4, %37 : vector<1x512xi32>
    %c0_i32_4 = arith.constant 0 : i32
    %39 = vector.broadcast %c0_i32_4 : i32 to vector<1x512xi32>
    %40 = arith.cmpi eq, %38, %39 : vector<1x512xi32>
    %c7_i32 = arith.constant 7 : i32
    %41 = vector.broadcast %c7_i32 : i32 to vector<1x512xi32>
    %42 = arith.andi %4, %41 : vector<1x512xi32>
    %c0_i32_5 = arith.constant 0 : i32
    %43 = vector.broadcast %c0_i32_5 : i32 to vector<1x512xi32>
    %44 = arith.cmpi eq, %42, %43 : vector<1x512xi32>
    %c0_6 = arith.constant 0 : index
    %c0_7 = arith.constant 0 : index
    %45 = vector.load %arg2[%c0_6, %c0_7] : memref<160x49xf32, #tpu.memory_space<vmem>>, vector<4x3xf32>
    %c0_8 = arith.constant 0 : index
    %c48 = arith.constant 48 : index
    %46 = vector.load %arg2[%c0_8, %c48] : memref<160x49xf32, #tpu.memory_space<vmem>>, vector<4x1xf32>
    %c8 = arith.constant 8 : index
    %c0_9 = arith.constant 0 : index
    %47 = vector.load %arg2[%c8, %c0_9] : memref<160x49xf32, #tpu.memory_space<vmem>>, vector<4x12xf32>
    %c8_10 = arith.constant 8 : index
    %c48_11 = arith.constant 48 : index
    %48 = vector.load %arg2[%c8_10, %c48_11] : memref<160x49xf32, #tpu.memory_space<vmem>>, vector<4x1xf32>
    %c16 = arith.constant 16 : index
    %c0_12 = arith.constant 0 : index
    %49 = vector.load %arg2[%c16, %c0_12] : memref<160x49xf32, #tpu.memory_space<vmem>>, vector<4x1xf32>
    %c16_13 = arith.constant 16 : index
    %c48_14 = arith.constant 48 : index
    %50 = vector.load %arg2[%c16_13, %c48_14] : memref<160x49xf32, #tpu.memory_space<vmem>>, vector<4x1xf32>
    %c1_i32_15 = arith.constant 1 : i32
    %51 = tpu.dynamic_rotate %1 by %c1_i32_15 dim 1 : vector<1x512xf32>, i32 -> vector<1x512xf32>
    %52 = arith.mulf %51, %24 : vector<1x512xf32>
    %c511_i32 = arith.constant 511 : i32
    %53 = tpu.dynamic_rotate %1 by %c511_i32 dim 1 : vector<1x512xf32>, i32 -> vector<1x512xf32>
    %54 = arith.mulf %53, %8 : vector<1x512xf32>
    %55 = vector.extract_strided_slice %45 {offsets = [0, 0], sizes = [4, 1], strides = [1, 1]} : vector<4x3xf32> to vector<4x1xf32>
    %56 = vector.broadcast %55 : vector<4x1xf32> to vector<4x512xf32>
    %57 = vector.broadcast %52 : vector<1x512xf32> to vector<4x512xf32>
    %58 = arith.mulf %56, %57 : vector<4x512xf32>
    %59 = vector.extract_strided_slice %45 {offsets = [0, 1], sizes = [4, 1], strides = [1, 1]} : vector<4x3xf32> to vector<4x1xf32>
    %60 = vector.broadcast %59 : vector<4x1xf32> to vector<4x512xf32>
    %61 = vector.broadcast %1 : vector<1x512xf32> to vector<4x512xf32>
    %62 = arith.mulf %60, %61 : vector<4x512xf32>
    %63 = arith.addf %58, %62 : vector<4x512xf32>
    %64 = vector.extract_strided_slice %45 {offsets = [0, 2], sizes = [4, 1], strides = [1, 1]} : vector<4x3xf32> to vector<4x1xf32>
    %65 = vector.broadcast %64 : vector<4x1xf32> to vector<4x512xf32>
    %66 = vector.broadcast %54 : vector<1x512xf32> to vector<4x512xf32>
    %67 = arith.mulf %65, %66 : vector<4x512xf32>
    %68 = arith.addf %63, %67 : vector<4x512xf32>
    %69 = vector.broadcast %46 : vector<4x1xf32> to vector<4x512xf32>
    %70 = arith.addf %68, %69 : vector<4x512xf32>
    %cst = arith.constant 0.000000e+00 : f32
    %71 = vector.broadcast %cst : f32 to vector<4x512xf32>
    %72 = arith.maximumf %70, %71 : vector<4x512xf32>
    %c1_i32_16 = arith.constant 1 : i32
    %73 = tpu.dynamic_rotate %72 by %c1_i32_16 dim 1 : vector<4x512xf32>, i32 -> vector<4x512xf32>
    %74 = vector.broadcast %24 : vector<1x512xf32> to vector<4x512xf32>
    %75 = arith.mulf %73, %74 : vector<4x512xf32>
    %c511_i32_17 = arith.constant 511 : i32
    %76 = tpu.dynamic_rotate %72 by %c511_i32_17 dim 1 : vector<4x512xf32>, i32 -> vector<4x512xf32>
    %77 = vector.broadcast %8 : vector<1x512xf32> to vector<4x512xf32>
    %78 = arith.mulf %76, %77 : vector<4x512xf32>
    %79 = tpu.concatenate %75, %72, %78 in 0 : vector<4x512xf32>, vector<4x512xf32>, vector<4x512xf32> -> vector<12x512xf32>
    %cst_18 = arith.constant dense<0.000000e+00> : vector<4x512xf32>
    %80 = tpu.matmul %47, %79, %cst_18 {dimension_numbers = #tpu.dot_dimension_numbers<[1], [0], [0], [1], [0, 0, 1, 1], [], []>} : vector<4x12xf32>, vector<12x512xf32>, vector<4x512xf32> -> vector<4x512xf32>
    %81 = vector.broadcast %48 : vector<4x1xf32> to vector<4x512xf32>
    %82 = arith.addf %80, %81 : vector<4x512xf32>
    %83 = vector.broadcast %49 : vector<4x1xf32> to vector<4x512xf32>
    %84 = vector.broadcast %1 : vector<1x512xf32> to vector<4x512xf32>
    %85 = arith.mulf %83, %84 : vector<4x512xf32>
    %86 = vector.broadcast %50 : vector<4x1xf32> to vector<4x512xf32>
    %87 = arith.addf %85, %86 : vector<4x512xf32>
    %88 = arith.addf %82, %87 : vector<4x512xf32>
    %cst_19 = arith.constant 0.000000e+00 : f32
    %89 = vector.broadcast %cst_19 : f32 to vector<4x512xf32>
    %90 = arith.maximumf %88, %89 : vector<4x512xf32>
    %c511_i32_20 = arith.constant 511 : i32
    %91 = tpu.dynamic_rotate %90 by %c511_i32_20 dim 1 : vector<4x512xf32>, i32 -> vector<4x512xf32>
    %92 = vector.broadcast %8 : vector<1x512xf32> to vector<4x512xf32>
    %93 = arith.mulf %91, %92 : vector<4x512xf32>
    %94 = arith.maximumf %90, %93 : vector<4x512xf32>
    %c24 = arith.constant 24 : index
    %c0_21 = arith.constant 0 : index
    %95 = vector.load %arg2[%c24, %c0_21] : memref<160x49xf32, #tpu.memory_space<vmem>>, vector<8x12xf32>
    %c24_22 = arith.constant 24 : index
    %c48_23 = arith.constant 48 : index
    %96 = vector.load %arg2[%c24_22, %c48_23] : memref<160x49xf32, #tpu.memory_space<vmem>>, vector<8x1xf32>
    %c32 = arith.constant 32 : index
    %c0_24 = arith.constant 0 : index
    %97 = vector.load %arg2[%c32, %c0_24] : memref<160x49xf32, #tpu.memory_space<vmem>>, vector<8x24xf32>
    %c32_25 = arith.constant 32 : index
    %c48_26 = arith.constant 48 : index
    %98 = vector.load %arg2[%c32_25, %c48_26] : memref<160x49xf32, #tpu.memory_space<vmem>>, vector<8x1xf32>
    %c40 = arith.constant 40 : index
    %c0_27 = arith.constant 0 : index
    %99 = vector.load %arg2[%c40, %c0_27] : memref<160x49xf32, #tpu.memory_space<vmem>>, vector<8x4xf32>
    %c40_28 = arith.constant 40 : index
    %c48_29 = arith.constant 48 : index
    %100 = vector.load %arg2[%c40_28, %c48_29] : memref<160x49xf32, #tpu.memory_space<vmem>>, vector<8x1xf32>
    %c2_i32_30 = arith.constant 2 : i32
    %101 = tpu.dynamic_rotate %94 by %c2_i32_30 dim 1 : vector<4x512xf32>, i32 -> vector<4x512xf32>
    %102 = vector.broadcast %28 : vector<1x512xf32> to vector<4x512xf32>
    %103 = arith.mulf %101, %102 : vector<4x512xf32>
    %c510_i32 = arith.constant 510 : i32
    %104 = tpu.dynamic_rotate %94 by %c510_i32 dim 1 : vector<4x512xf32>, i32 -> vector<4x512xf32>
    %105 = vector.broadcast %12 : vector<1x512xf32> to vector<4x512xf32>
    %106 = arith.mulf %104, %105 : vector<4x512xf32>
    %107 = tpu.concatenate %103, %94, %106 in 0 : vector<4x512xf32>, vector<4x512xf32>, vector<4x512xf32> -> vector<12x512xf32>
    %cst_31 = arith.constant dense<0.000000e+00> : vector<8x512xf32>
    %108 = tpu.matmul %95, %107, %cst_31 {dimension_numbers = #tpu.dot_dimension_numbers<[1], [0], [0], [1], [0, 0, 1, 1], [], []>} : vector<8x12xf32>, vector<12x512xf32>, vector<8x512xf32> -> vector<8x512xf32>
    %109 = vector.broadcast %96 : vector<8x1xf32> to vector<8x512xf32>
    %110 = arith.addf %108, %109 : vector<8x512xf32>
    %cst_32 = arith.constant 0.000000e+00 : f32
    %111 = vector.broadcast %cst_32 : f32 to vector<8x512xf32>
    %112 = arith.maximumf %110, %111 : vector<8x512xf32>
    %c2_i32_33 = arith.constant 2 : i32
    %113 = tpu.dynamic_rotate %112 by %c2_i32_33 dim 1 : vector<8x512xf32>, i32 -> vector<8x512xf32>
    %114 = vector.broadcast %28 : vector<1x512xf32> to vector<8x512xf32>
    %115 = arith.mulf %113, %114 : vector<8x512xf32>
    %c510_i32_34 = arith.constant 510 : i32
    %116 = tpu.dynamic_rotate %112 by %c510_i32_34 dim 1 : vector<8x512xf32>, i32 -> vector<8x512xf32>
    %117 = vector.broadcast %12 : vector<1x512xf32> to vector<8x512xf32>
    %118 = arith.mulf %116, %117 : vector<8x512xf32>
    %119 = tpu.concatenate %115, %112, %118 in 0 : vector<8x512xf32>, vector<8x512xf32>, vector<8x512xf32> -> vector<24x512xf32>
    %cst_35 = arith.constant dense<0.000000e+00> : vector<8x512xf32>
    %120 = tpu.matmul %97, %119, %cst_35 {dimension_numbers = #tpu.dot_dimension_numbers<[1], [0], [0], [1], [0, 0, 1, 1], [], []>} : vector<8x24xf32>, vector<24x512xf32>, vector<8x512xf32> -> vector<8x512xf32>
    %121 = vector.broadcast %98 : vector<8x1xf32> to vector<8x512xf32>
    %122 = arith.addf %120, %121 : vector<8x512xf32>
    %123 = vector.extract_strided_slice %94 {offsets = [0, 0], sizes = [1, 512], strides = [1, 1]} : vector<4x512xf32> to vector<1x512xf32>
    %124 = vector.extract_strided_slice %94 {offsets = [1, 0], sizes = [1, 512], strides = [1, 1]} : vector<4x512xf32> to vector<1x512xf32>
    %125 = vector.extract_strided_slice %94 {offsets = [2, 0], sizes = [1, 512], strides = [1, 1]} : vector<4x512xf32> to vector<1x512xf32>
    %126 = vector.extract_strided_slice %94 {offsets = [3, 0], sizes = [1, 512], strides = [1, 1]} : vector<4x512xf32> to vector<1x512xf32>
    %127 = vector.extract_strided_slice %99 {offsets = [0, 0], sizes = [8, 1], strides = [1, 1]} : vector<8x4xf32> to vector<8x1xf32>
    %128 = vector.broadcast %127 : vector<8x1xf32> to vector<8x512xf32>
    %129 = vector.broadcast %123 : vector<1x512xf32> to vector<8x512xf32>
    %130 = arith.mulf %128, %129 : vector<8x512xf32>
    %131 = vector.extract_strided_slice %99 {offsets = [0, 1], sizes = [8, 1], strides = [1, 1]} : vector<8x4xf32> to vector<8x1xf32>
    %132 = vector.broadcast %131 : vector<8x1xf32> to vector<8x512xf32>
    %133 = vector.broadcast %124 : vector<1x512xf32> to vector<8x512xf32>
    %134 = arith.mulf %132, %133 : vector<8x512xf32>
    %135 = arith.addf %130, %134 : vector<8x512xf32>
    %136 = vector.extract_strided_slice %99 {offsets = [0, 2], sizes = [8, 1], strides = [1, 1]} : vector<8x4xf32> to vector<8x1xf32>
    %137 = vector.broadcast %136 : vector<8x1xf32> to vector<8x512xf32>
    %138 = vector.broadcast %125 : vector<1x512xf32> to vector<8x512xf32>
    %139 = arith.mulf %137, %138 : vector<8x512xf32>
    %140 = arith.addf %135, %139 : vector<8x512xf32>
    %141 = vector.extract_strided_slice %99 {offsets = [0, 3], sizes = [8, 1], strides = [1, 1]} : vector<8x4xf32> to vector<8x1xf32>
    %142 = vector.broadcast %141 : vector<8x1xf32> to vector<8x512xf32>
    %143 = vector.broadcast %126 : vector<1x512xf32> to vector<8x512xf32>
    %144 = arith.mulf %142, %143 : vector<8x512xf32>
    %145 = arith.addf %140, %144 : vector<8x512xf32>
    %146 = vector.broadcast %100 : vector<8x1xf32> to vector<8x512xf32>
    %147 = arith.addf %145, %146 : vector<8x512xf32>
    %148 = arith.addf %122, %147 : vector<8x512xf32>
    %cst_36 = arith.constant 0.000000e+00 : f32
    %149 = vector.broadcast %cst_36 : f32 to vector<8x512xf32>
    %150 = arith.maximumf %148, %149 : vector<8x512xf32>
    %c510_i32_37 = arith.constant 510 : i32
    %151 = tpu.dynamic_rotate %150 by %c510_i32_37 dim 1 : vector<8x512xf32>, i32 -> vector<8x512xf32>
    %152 = vector.broadcast %12 : vector<1x512xf32> to vector<8x512xf32>
    %153 = arith.mulf %151, %152 : vector<8x512xf32>
    %154 = arith.maximumf %150, %153 : vector<8x512xf32>
    %c48_38 = arith.constant 48 : index
    %c0_39 = arith.constant 0 : index
    %155 = vector.load %arg2[%c48_38, %c0_39] : memref<160x49xf32, #tpu.memory_space<vmem>>, vector<16x24xf32>
    %c48_40 = arith.constant 48 : index
    %c48_41 = arith.constant 48 : index
    %156 = vector.load %arg2[%c48_40, %c48_41] : memref<160x49xf32, #tpu.memory_space<vmem>>, vector<16x1xf32>
    %c64 = arith.constant 64 : index
    %c0_42 = arith.constant 0 : index
    %157 = vector.load %arg2[%c64, %c0_42] : memref<160x49xf32, #tpu.memory_space<vmem>>, vector<16x48xf32>
    %c64_43 = arith.constant 64 : index
    %c48_44 = arith.constant 48 : index
    %158 = vector.load %arg2[%c64_43, %c48_44] : memref<160x49xf32, #tpu.memory_space<vmem>>, vector<16x1xf32>
    %c80 = arith.constant 80 : index
    %c0_45 = arith.constant 0 : index
    %159 = vector.load %arg2[%c80, %c0_45] : memref<160x49xf32, #tpu.memory_space<vmem>>, vector<16x8xf32>
    %c80_46 = arith.constant 80 : index
    %c48_47 = arith.constant 48 : index
    %160 = vector.load %arg2[%c80_46, %c48_47] : memref<160x49xf32, #tpu.memory_space<vmem>>, vector<16x1xf32>
    %c4_i32_48 = arith.constant 4 : i32
    %161 = tpu.dynamic_rotate %154 by %c4_i32_48 dim 1 : vector<8x512xf32>, i32 -> vector<8x512xf32>
    %162 = vector.broadcast %32 : vector<1x512xf32> to vector<8x512xf32>
    %163 = arith.mulf %161, %162 : vector<8x512xf32>
    %c508_i32 = arith.constant 508 : i32
    %164 = tpu.dynamic_rotate %154 by %c508_i32 dim 1 : vector<8x512xf32>, i32 -> vector<8x512xf32>
    %165 = vector.broadcast %16 : vector<1x512xf32> to vector<8x512xf32>
    %166 = arith.mulf %164, %165 : vector<8x512xf32>
    %167 = tpu.concatenate %163, %154, %166 in 0 : vector<8x512xf32>, vector<8x512xf32>, vector<8x512xf32> -> vector<24x512xf32>
    %cst_49 = arith.constant dense<0.000000e+00> : vector<16x512xf32>
    %168 = tpu.matmul %155, %167, %cst_49 {dimension_numbers = #tpu.dot_dimension_numbers<[1], [0], [0], [1], [0, 0, 1, 1], [], []>} : vector<16x24xf32>, vector<24x512xf32>, vector<16x512xf32> -> vector<16x512xf32>
    %169 = vector.broadcast %156 : vector<16x1xf32> to vector<16x512xf32>
    %170 = arith.addf %168, %169 : vector<16x512xf32>
    %cst_50 = arith.constant 0.000000e+00 : f32
    %171 = vector.broadcast %cst_50 : f32 to vector<16x512xf32>
    %172 = arith.maximumf %170, %171 : vector<16x512xf32>
    %c4_i32_51 = arith.constant 4 : i32
    %173 = tpu.dynamic_rotate %172 by %c4_i32_51 dim 1 : vector<16x512xf32>, i32 -> vector<16x512xf32>
    %174 = vector.broadcast %32 : vector<1x512xf32> to vector<16x512xf32>
    %175 = arith.mulf %173, %174 : vector<16x512xf32>
    %c508_i32_52 = arith.constant 508 : i32
    %176 = tpu.dynamic_rotate %172 by %c508_i32_52 dim 1 : vector<16x512xf32>, i32 -> vector<16x512xf32>
    %177 = vector.broadcast %16 : vector<1x512xf32> to vector<16x512xf32>
    %178 = arith.mulf %176, %177 : vector<16x512xf32>
    %179 = tpu.concatenate %175, %172, %178 in 0 : vector<16x512xf32>, vector<16x512xf32>, vector<16x512xf32> -> vector<48x512xf32>
    %cst_53 = arith.constant dense<0.000000e+00> : vector<16x512xf32>
    %180 = tpu.matmul %157, %179, %cst_53 {dimension_numbers = #tpu.dot_dimension_numbers<[1], [0], [0], [1], [0, 0, 1, 1], [], []>} : vector<16x48xf32>, vector<48x512xf32>, vector<16x512xf32> -> vector<16x512xf32>
    %181 = vector.broadcast %158 : vector<16x1xf32> to vector<16x512xf32>
    %182 = arith.addf %180, %181 : vector<16x512xf32>
    %cst_54 = arith.constant dense<0.000000e+00> : vector<16x512xf32>
    %183 = tpu.matmul %159, %154, %cst_54 {dimension_numbers = #tpu.dot_dimension_numbers<[1], [0], [0], [1], [0, 0, 1, 1], [], []>} : vector<16x8xf32>, vector<8x512xf32>, vector<16x512xf32> -> vector<16x512xf32>
    %184 = vector.broadcast %160 : vector<16x1xf32> to vector<16x512xf32>
    %185 = arith.addf %183, %184 : vector<16x512xf32>
    %186 = arith.addf %182, %185 : vector<16x512xf32>
    %cst_55 = arith.constant 0.000000e+00 : f32
    %187 = vector.broadcast %cst_55 : f32 to vector<16x512xf32>
    %188 = arith.maximumf %186, %187 : vector<16x512xf32>
    %c508_i32_56 = arith.constant 508 : i32
    %189 = tpu.dynamic_rotate %188 by %c508_i32_56 dim 1 : vector<16x512xf32>, i32 -> vector<16x512xf32>
    %190 = vector.broadcast %16 : vector<1x512xf32> to vector<16x512xf32>
    %191 = arith.mulf %189, %190 : vector<16x512xf32>
    %192 = arith.maximumf %188, %191 : vector<16x512xf32>
    %c96 = arith.constant 96 : index
    %c0_57 = arith.constant 0 : index
    %193 = vector.load %arg2[%c96, %c0_57] : memref<160x49xf32, #tpu.memory_space<vmem>>, vector<16x32xf32>
    %c96_58 = arith.constant 96 : index
    %c48_59 = arith.constant 48 : index
    %194 = vector.load %arg2[%c96_58, %c48_59] : memref<160x49xf32, #tpu.memory_space<vmem>>, vector<16x1xf32>
    %c112 = arith.constant 112 : index
    %c0_60 = arith.constant 0 : index
    %195 = vector.load %arg2[%c112, %c0_60] : memref<160x49xf32, #tpu.memory_space<vmem>>, vector<8x24xf32>
    %c112_61 = arith.constant 112 : index
    %c48_62 = arith.constant 48 : index
    %196 = vector.load %arg2[%c112_61, %c48_62] : memref<160x49xf32, #tpu.memory_space<vmem>>, vector<8x1xf32>
    %c120 = arith.constant 120 : index
    %c0_63 = arith.constant 0 : index
    %197 = vector.load %arg2[%c120, %c0_63] : memref<160x49xf32, #tpu.memory_space<vmem>>, vector<8x16xf32>
    %c120_64 = arith.constant 120 : index
    %c48_65 = arith.constant 48 : index
    %198 = vector.load %arg2[%c120_64, %c48_65] : memref<160x49xf32, #tpu.memory_space<vmem>>, vector<8x1xf32>
    %c504_i32 = arith.constant 504 : i32
    %199 = tpu.dynamic_rotate %192 by %c504_i32 dim 1 : vector<16x512xf32>, i32 -> vector<16x512xf32>
    %200 = vector.broadcast %20 : vector<1x512xf32> to vector<16x512xf32>
    %201 = arith.mulf %199, %200 : vector<16x512xf32>
    %202 = tpu.concatenate %192, %201 in 0 : vector<16x512xf32>, vector<16x512xf32> -> vector<32x512xf32>
    %cst_66 = arith.constant dense<0.000000e+00> : vector<16x512xf32>
    %203 = tpu.matmul %193, %202, %cst_66 {dimension_numbers = #tpu.dot_dimension_numbers<[1], [0], [0], [1], [0, 0, 1, 1], [], []>} : vector<16x32xf32>, vector<32x512xf32>, vector<16x512xf32> -> vector<16x512xf32>
    %204 = vector.broadcast %194 : vector<16x1xf32> to vector<16x512xf32>
    %205 = arith.addf %203, %204 : vector<16x512xf32>
    %206 = vector.extract_strided_slice %205 {offsets = [0, 0], sizes = [8, 512], strides = [1, 1]} : vector<16x512xf32> to vector<8x512xf32>
    %207 = vector.extract_strided_slice %205 {offsets = [8, 0], sizes = [8, 512], strides = [1, 1]} : vector<16x512xf32> to vector<8x512xf32>
    %c4_i32_67 = arith.constant 4 : i32
    %208 = tpu.dynamic_rotate %207 by %c4_i32_67 dim 1 : vector<8x512xf32>, i32 -> vector<8x512xf32>
    %209 = vector.shape_cast %44 : vector<1x512xi1> to vector<1x512xi1>
    %210 = vector.broadcast %209 : vector<1x512xi1> to vector<8x512xi1>
    %211 = arith.select %210, %206, %208 : vector<8x512xi1>, vector<8x512xf32>
    %cst_68 = arith.constant 0.000000e+00 : f32
    %212 = vector.broadcast %cst_68 : f32 to vector<8x512xf32>
    %213 = arith.maximumf %211, %212 : vector<8x512xf32>
    %c4_i32_69 = arith.constant 4 : i32
    %214 = tpu.dynamic_rotate %213 by %c4_i32_69 dim 1 : vector<8x512xf32>, i32 -> vector<8x512xf32>
    %215 = vector.broadcast %32 : vector<1x512xf32> to vector<8x512xf32>
    %216 = arith.mulf %214, %215 : vector<8x512xf32>
    %c508_i32_70 = arith.constant 508 : i32
    %217 = tpu.dynamic_rotate %213 by %c508_i32_70 dim 1 : vector<8x512xf32>, i32 -> vector<8x512xf32>
    %218 = vector.broadcast %16 : vector<1x512xf32> to vector<8x512xf32>
    %219 = arith.mulf %217, %218 : vector<8x512xf32>
    %220 = tpu.concatenate %216, %213, %219 in 0 : vector<8x512xf32>, vector<8x512xf32>, vector<8x512xf32> -> vector<24x512xf32>
    %cst_71 = arith.constant dense<0.000000e+00> : vector<8x512xf32>
    %221 = tpu.matmul %195, %220, %cst_71 {dimension_numbers = #tpu.dot_dimension_numbers<[1], [0], [0], [1], [0, 0, 1, 1], [], []>} : vector<8x24xf32>, vector<24x512xf32>, vector<8x512xf32> -> vector<8x512xf32>
    %222 = vector.broadcast %196 : vector<8x1xf32> to vector<8x512xf32>
    %223 = arith.addf %221, %222 : vector<8x512xf32>
    %cst_72 = arith.constant dense<0.000000e+00> : vector<8x512xf32>
    %224 = tpu.matmul %197, %192, %cst_72 {dimension_numbers = #tpu.dot_dimension_numbers<[1], [0], [0], [1], [0, 0, 1, 1], [], []>} : vector<8x16xf32>, vector<16x512xf32>, vector<8x512xf32> -> vector<8x512xf32>
    %cst_73 = arith.constant 0.000000e+00 : f32
    %225 = vector.shape_cast %44 : vector<1x512xi1> to vector<1x512xi1>
    %226 = vector.broadcast %225 : vector<1x512xi1> to vector<8x512xi1>
    %227 = vector.broadcast %cst_73 : f32 to vector<8x512xf32>
    %228 = arith.select %226, %224, %227 : vector<8x512xi1>, vector<8x512xf32>
    %229 = vector.broadcast %198 : vector<8x1xf32> to vector<8x512xf32>
    %230 = arith.addf %228, %229 : vector<8x512xf32>
    %231 = arith.addf %223, %230 : vector<8x512xf32>
    %cst_74 = arith.constant 0.000000e+00 : f32
    %232 = vector.broadcast %cst_74 : f32 to vector<8x512xf32>
    %233 = arith.maximumf %231, %232 : vector<8x512xf32>
    %c128 = arith.constant 128 : index
    %c0_75 = arith.constant 0 : index
    %234 = vector.load %arg2[%c128, %c0_75] : memref<160x49xf32, #tpu.memory_space<vmem>>, vector<8x16xf32>
    %c128_76 = arith.constant 128 : index
    %c48_77 = arith.constant 48 : index
    %235 = vector.load %arg2[%c128_76, %c48_77] : memref<160x49xf32, #tpu.memory_space<vmem>>, vector<8x1xf32>
    %c136 = arith.constant 136 : index
    %c0_78 = arith.constant 0 : index
    %236 = vector.load %arg2[%c136, %c0_78] : memref<160x49xf32, #tpu.memory_space<vmem>>, vector<4x12xf32>
    %c136_79 = arith.constant 136 : index
    %c48_80 = arith.constant 48 : index
    %237 = vector.load %arg2[%c136_79, %c48_80] : memref<160x49xf32, #tpu.memory_space<vmem>>, vector<4x1xf32>
    %c144 = arith.constant 144 : index
    %c0_81 = arith.constant 0 : index
    %238 = vector.load %arg2[%c144, %c0_81] : memref<160x49xf32, #tpu.memory_space<vmem>>, vector<4x8xf32>
    %c144_82 = arith.constant 144 : index
    %c48_83 = arith.constant 48 : index
    %239 = vector.load %arg2[%c144_82, %c48_83] : memref<160x49xf32, #tpu.memory_space<vmem>>, vector<4x1xf32>
    %c508_i32_84 = arith.constant 508 : i32
    %240 = tpu.dynamic_rotate %233 by %c508_i32_84 dim 1 : vector<8x512xf32>, i32 -> vector<8x512xf32>
    %241 = vector.broadcast %16 : vector<1x512xf32> to vector<8x512xf32>
    %242 = arith.mulf %240, %241 : vector<8x512xf32>
    %243 = tpu.concatenate %233, %242 in 0 : vector<8x512xf32>, vector<8x512xf32> -> vector<16x512xf32>
    %cst_85 = arith.constant dense<0.000000e+00> : vector<8x512xf32>
    %244 = tpu.matmul %234, %243, %cst_85 {dimension_numbers = #tpu.dot_dimension_numbers<[1], [0], [0], [1], [0, 0, 1, 1], [], []>} : vector<8x16xf32>, vector<16x512xf32>, vector<8x512xf32> -> vector<8x512xf32>
    %245 = vector.broadcast %235 : vector<8x1xf32> to vector<8x512xf32>
    %246 = arith.addf %244, %245 : vector<8x512xf32>
    %247 = vector.extract_strided_slice %246 {offsets = [0, 0], sizes = [4, 512], strides = [1, 1]} : vector<8x512xf32> to vector<4x512xf32>
    %248 = vector.extract_strided_slice %246 {offsets = [4, 0], sizes = [4, 512], strides = [1, 1]} : vector<8x512xf32> to vector<4x512xf32>
    %c2_i32_86 = arith.constant 2 : i32
    %249 = tpu.dynamic_rotate %248 by %c2_i32_86 dim 1 : vector<4x512xf32>, i32 -> vector<4x512xf32>
    %250 = vector.shape_cast %40 : vector<1x512xi1> to vector<1x512xi1>
    %251 = vector.broadcast %250 : vector<1x512xi1> to vector<4x512xi1>
    %252 = arith.select %251, %247, %249 : vector<4x512xi1>, vector<4x512xf32>
    %cst_87 = arith.constant 0.000000e+00 : f32
    %253 = vector.broadcast %cst_87 : f32 to vector<4x512xf32>
    %254 = arith.maximumf %252, %253 : vector<4x512xf32>
    %c2_i32_88 = arith.constant 2 : i32
    %255 = tpu.dynamic_rotate %254 by %c2_i32_88 dim 1 : vector<4x512xf32>, i32 -> vector<4x512xf32>
    %256 = vector.broadcast %28 : vector<1x512xf32> to vector<4x512xf32>
    %257 = arith.mulf %255, %256 : vector<4x512xf32>
    %c510_i32_89 = arith.constant 510 : i32
    %258 = tpu.dynamic_rotate %254 by %c510_i32_89 dim 1 : vector<4x512xf32>, i32 -> vector<4x512xf32>
    %259 = vector.broadcast %12 : vector<1x512xf32> to vector<4x512xf32>
    %260 = arith.mulf %258, %259 : vector<4x512xf32>
    %261 = tpu.concatenate %257, %254, %260 in 0 : vector<4x512xf32>, vector<4x512xf32>, vector<4x512xf32> -> vector<12x512xf32>
    %cst_90 = arith.constant dense<0.000000e+00> : vector<4x512xf32>
    %262 = tpu.matmul %236, %261, %cst_90 {dimension_numbers = #tpu.dot_dimension_numbers<[1], [0], [0], [1], [0, 0, 1, 1], [], []>} : vector<4x12xf32>, vector<12x512xf32>, vector<4x512xf32> -> vector<4x512xf32>
    %263 = vector.broadcast %237 : vector<4x1xf32> to vector<4x512xf32>
    %264 = arith.addf %262, %263 : vector<4x512xf32>
    %cst_91 = arith.constant dense<0.000000e+00> : vector<4x512xf32>
    %265 = tpu.matmul %238, %233, %cst_91 {dimension_numbers = #tpu.dot_dimension_numbers<[1], [0], [0], [1], [0, 0, 1, 1], [], []>} : vector<4x8xf32>, vector<8x512xf32>, vector<4x512xf32> -> vector<4x512xf32>
    %cst_92 = arith.constant 0.000000e+00 : f32
    %266 = vector.shape_cast %40 : vector<1x512xi1> to vector<1x512xi1>
    %267 = vector.broadcast %266 : vector<1x512xi1> to vector<4x512xi1>
    %268 = vector.broadcast %cst_92 : f32 to vector<4x512xf32>
    %269 = arith.select %267, %265, %268 : vector<4x512xi1>, vector<4x512xf32>
    %270 = vector.broadcast %239 : vector<4x1xf32> to vector<4x512xf32>
    %271 = arith.addf %269, %270 : vector<4x512xf32>
    %272 = arith.addf %264, %271 : vector<4x512xf32>
    %cst_93 = arith.constant 0.000000e+00 : f32
    %273 = vector.broadcast %cst_93 : f32 to vector<4x512xf32>
    %274 = arith.maximumf %272, %273 : vector<4x512xf32>
    %c152 = arith.constant 152 : index
    %c0_94 = arith.constant 0 : index
    %275 = vector.load %arg2[%c152, %c0_94] : memref<160x49xf32, #tpu.memory_space<vmem>>, vector<2x8xf32>
    %c152_95 = arith.constant 152 : index
    %c48_96 = arith.constant 48 : index
    %276 = vector.load %arg2[%c152_95, %c48_96] : memref<160x49xf32, #tpu.memory_space<vmem>>, vector<2x1xf32>
    %c510_i32_97 = arith.constant 510 : i32
    %277 = tpu.dynamic_rotate %274 by %c510_i32_97 dim 1 : vector<4x512xf32>, i32 -> vector<4x512xf32>
    %278 = vector.broadcast %12 : vector<1x512xf32> to vector<4x512xf32>
    %279 = arith.mulf %277, %278 : vector<4x512xf32>
    %280 = tpu.concatenate %274, %279 in 0 : vector<4x512xf32>, vector<4x512xf32> -> vector<8x512xf32>
    %cst_98 = arith.constant dense<0.000000e+00> : vector<2x512xf32>
    %281 = tpu.matmul %275, %280, %cst_98 {dimension_numbers = #tpu.dot_dimension_numbers<[1], [0], [0], [1], [0, 0, 1, 1], [], []>} : vector<2x8xf32>, vector<8x512xf32>, vector<2x512xf32> -> vector<2x512xf32>
    %282 = vector.broadcast %276 : vector<2x1xf32> to vector<2x512xf32>
    %283 = arith.addf %281, %282 : vector<2x512xf32>
    %284 = vector.extract_strided_slice %283 {offsets = [0, 0], sizes = [1, 512], strides = [1, 1]} : vector<2x512xf32> to vector<1x512xf32>
    %285 = vector.extract_strided_slice %283 {offsets = [1, 0], sizes = [1, 512], strides = [1, 1]} : vector<2x512xf32> to vector<1x512xf32>
    %c1_i32_99 = arith.constant 1 : i32
    %286 = tpu.dynamic_rotate %285 by %c1_i32_99 dim 1 : vector<1x512xf32>, i32 -> vector<1x512xf32>
    %287 = arith.select %36, %284, %286 : vector<1x512xi1>, vector<1x512xf32>
    %288 = vector.shape_cast %287 : vector<1x512xf32> to vector<1x1x512xf32>
    %c0_100 = arith.constant 0 : index
    %c0_101 = arith.constant 0 : index
    %c0_102 = arith.constant 0 : index
    %289 = vector.load %arg3[%c0_100, %c0_101, %c0_102] : memref<1x1x512xf32, #tpu.memory_space<vmem>>, vector<1x1x512xf32>
    tpu.vector_store %arg3[%c0_100, %c0_101, %c0_102], %288 {strides = array<i32>} : memref<1x1x512xf32, #tpu.memory_space<vmem>>, vector<1x1x512xf32>,
    return
  }
  func.func @transform_0(%arg0: i32) -> (i32, i32, i32) {
    %c0_i32 = arith.constant 0 : i32
    %c0_i32_0 = arith.constant 0 : i32
    %c0_i32_1 = arith.constant 0 : i32
    return %arg0, %c0_i32, %c0_i32_0 : i32, i32, i32
  }
  func.func @transform_1(%arg0: i32) -> (i32, i32) {
    %c0_i32 = arith.constant 0 : i32
    %c0_i32_0 = arith.constant 0 : i32
    %c0_i32_1 = arith.constant 0 : i32
    return %c0_i32, %c0_i32_0 : i32, i32
  }
  func.func @transform_2(%arg0: i32) -> (i32, i32, i32) {
    %c0_i32 = arith.constant 0 : i32
    %c0_i32_0 = arith.constant 0 : i32
    %c0_i32_1 = arith.constant 0 : i32
    return %arg0, %c0_i32, %c0_i32_0 : i32, i32, i32
  }
}

</mosaic_0001>

<bundles_post_ra>
// kernel: tpu_custom_call.1
= control target key start
LH: loop header
LB: loop body
LE: loop exit
PB: predicated region body
PF: predicated region fallthrough
CT: control target
= control target key end

     0   :  { %v4546_v1 = vlaneseq  ;;  %v3428_v2 = vmov 0   ;;  %v3429_v4 = vmov 2   ;;  %s4543_s0 = inlined_call_operand.vmem [shape: f32[1,1,512], index: 0, kind: input, shape index: {}]   ;;  %s4544_s1 = inlined_call_operand.vmem [shape: f32[160,49], index: 1, kind: input, shape index: {}]   ;;  %s4545_s2 = inlined_call_operand.hbm [shape: f32[1,1,512], index: 2, kind: output, shape index: {}]  }
   0x1   :  { %v130_v0 = vld [vmem:[%s4544_s1] sm:$0xf]  ;;  %3391 = vset.pattern.permute.xlu0 %v3428_v2  ;;  %3393 = vset.pattern.permute.xlu1 %v3429_v4 }
   0x2   :  { %190 = vperm.xlu0 %3391, %v130_v0   ;;  %v3464_v3 = vshrl.u32 %v4546_v1, 7 }
   0x3   :  { %7 = vsyncpa [#allocation3], 0  ;;  %v12_v5 = vld [vmem:[%s4543_s0] sm:$0xf]  ;;  %v4547_v6 = vmov 0.0   ;;  %v3431_v10 = vmov 1  }
   0x4   :  { %398 = vmatprep.mubr.f32.mxu0 %v4547_v6  ;;  %469 = vmatprep.mubr.f32.mxu1 %v4547_v6  ;;  %v3473_v7 = vsub.s32 0, %v3464_v3  ;;  %v3476_v8 = vsub.s32 1, %v3464_v3  ;;  %v3479_v9 = vsub.s32 3, %v3464_v3  ;;  %s3432_s0 = smov 1   ;;  %v3494_v14 = vsub.s32 2, %v3464_v3  ;;  %s3434_s13 = smov 127  }
   0x5   :  { %v3433_v16 = vmov 48   ;;  %v3517_v17 = vand.u32 127, %v4546_v1  ;;  %vm309_vm9 = vcmask 1043456   ;;  %vm3435_vm10 = vmmov 1   ;;  %s3436_s18 = smov 2   ;;  %s3437_s19 = smov 126  }
   0x6   :  { %3392 = vset.pattern.permute.xlu0 %v3431_v10  ;;  %v3483_v11 = vrot.slane %v12_v5, %v3473_v7  ;;  %v3486_v12 = vrot.slane %v12_v5, %v3479_v9  ;;  %v3491_v13 = vrot.slane %v12_v5, %v3476_v8  ;;  %v3501_v15 = vrot.slane %v12_v5, %v3494_v14  ;;  %vm3637_vm11 = vmpackc.low %vm309_vm9, %vm3435_vm10  ;;  %s3439_s26 = smov 4   ;;  %s3440_s27 = smov 124  }
   0x7   :  { %214 = vperm.xlu0 %3392, %v130_v0   ;;  %v15_v20 = vadd.s32 128, %v3517_v17  ;;  %v16_v21 = vadd.s32 256, %v3517_v17  ;;  %v17_v23 = vadd.s32 384, %v3517_v17  ;;  %vm70_vm0 = vcmp.ge.s32.totalorder %v3517_v17, 1  ;;  %s3441_s12 = smov 120  }
   0x8   :  { %154 = vrot.lane.b32.xlu1 %v3483_v11, %s3432_s0  ;;  %vm162_vm2 = vcmp.lt.s32.totalorder %v3517_v17, 1  ;;  %v3533_v30 = vsel %vm70_vm0, 1.0, %v4547_v6  ;;  %vm22_vm5 = vcmp.lt.s32.totalorder %v3517_v17, 127  ;;  %vm319_vm12 = vcmask 97280  }
   0x9   :  { %v3522_v24 = vand.u32 127, %v15_v20  ;;  %v3524_v26 = vand.u32 127, %v16_v21  ;;  %v3526_v27 = vand.u32 127, %v17_v23  ;;  %v3564_v46 = vsel %vm22_vm5, 1.0, %v4547_v6 }
   0xa   :  { %vm532_vm14 = vcmp.lt.s32.totalorder %v3517_v17, 2  ;;  %vm82_vm0 = vcmp.ge.s32.totalorder %v3517_v17, 2  ;;  %vm1080_vm10 = vcmp.lt.s32.totalorder %v3517_v17, 4 }
   0xb   :  { %160 = vrot.lane.b32.xlu0 %v3486_v12, %s3432_s0  ;;  %vm71_vm1 = vcmp.ge.s32.totalorder %v3522_v24, 1  ;;  %vm72_vm3 = vcmp.ge.s32.totalorder %v3524_v26, 1  ;;  %vm73_vm4 = vcmp.ge.s32.totalorder %v3526_v27, 1  ;;  %vm23_vm6 = vcmp.lt.s32.totalorder %v3522_v24, 127 }
   0xc   :  { %156 = vrot.lane.b32.xlu1 %v3491_v13, %s3432_s0  ;;  %3394 = vset.pattern.permute.xlu0 %v3433_v16  ;;  %v3538_v32 = vsel %vm71_vm1, 1.0, %v4547_v6  ;;  %v3544_v34 = vsel %vm72_vm3, 1.0, %v4547_v6  ;;  %v3551_v38 = vsel %vm73_vm4, 1.0, %v4547_v6  ;;  %v3567_v47 = vsel %vm23_vm6, 1.0, %v4547_v6 }
   0xd   :  { %vm24_vm7 = vcmp.lt.s32.totalorder %v3524_v26, 127  ;;  %vm25_vm8 = vcmp.lt.s32.totalorder %v3526_v27, 127  ;;  %vm83_vm13 = vcmp.ge.s32.totalorder %v3522_v24, 2  ;;  %vm84_vm15 = vcmp.ge.s32.totalorder %v3524_v26, 2 }
   0xe   :  { %v3586_v62 = vsel %vm24_vm7, 1.0, %v4547_v6  ;;  %v3589_v63 = vsel %vm25_vm8, 1.0, %v4547_v6  ;;  %vm85_vm1 = vcmp.ge.s32.totalorder %v3526_v27, 2  ;;  %vm34_vm3 = vcmp.lt.s32.totalorder %v3517_v17, 126 }
   0xf   :  { %171 = vrot.lane.b32.xlu0 %v3483_v11, %s3434_s13  ;;  %vm35_vm4 = vcmp.lt.s32.totalorder %v3522_v24, 126  ;;  %vm37_vm6 = vcmp.lt.s32.totalorder %v3526_v27, 126  ;;  %vm776_vm7 = vcmask 195584   ;;  %vm95_vm8 = vcmp.ge.s32.totalorder %v3522_v24, 4 }
  0x10   :  { %158 = vrot.lane.b32.xlu1 %v3501_v15, %s3432_s0 }
  0x13   :  { %175 = vrot.lane.b32.xlu0 %v3501_v15, %s3434_s13 }
  0x14   :  { %226 = vperm.xlu1 %3393, %v130_v0  }
  0x17   :  { %254 = vperm.xlu0 %3394, %v130_v0  }
  0x18   :  { %173 = vrot.lane.b32.xlu1 %v3491_v13, %s3434_s13 }
  0x19   :  { %3396 = vset.pattern.permute.xlu1 %v3433_v16 }
  0x1b   :  { %3395 = vset.pattern.permute.xlu0 %v3428_v2 }
  0x1c   :  { %177 = vrot.lane.b32.xlu1 %v3486_v12, %s3434_s13 }
  0x7a   :  { %v155_v18 = vpop.permute.xlu1 %154 }
  0x7e   :  { %v157_v25 = vpop.permute.xlu1 %156 }
  0x7f   :  { %v165_v33 = vsel %vm162_vm2, %v155_v18, %v157_v25 }
  0x80   :  { %v168_v37 = vmul.f32 %v3538_v32, %v165_v33 }
  0x81   :  { %v191_v19 = vpop.permute.xlu0 %190 }
  0x82   :  { %v159_v29 = vpop.permute.xlu1 %158  ;;  %v200_v45 = vrot.slane %v168_v37, %v3473_v7 }
  0x83   :  { %v164_v35 = vsel %vm162_vm2, %v157_v25, %v159_v29 }
  0x84   :  { %v169_v41 = vmul.f32 %v3544_v34, %v164_v35  ;;  %v210_v57 = vmul.f32 %v200_v45, %v191_v19 }
  0x86   :  { %v215_v22 = vpop.permute.xlu0 %214  ;;  %v204_v48 = vrot.slane %v169_v41, %v3473_v7 }
  0x87   :  { %v217_v49 = vmul.f32 %v215_v22, %v3483_v11  ;;  %v218_v50 = vmul.f32 %v215_v22, %v3491_v13  ;;  %v219_v60 = vmul.f32 %v215_v22, %v3501_v15  ;;  %v220_v61 = vmul.f32 %v215_v22, %v3486_v12 }
  0x88   :  { %v211_v0 = vmul.f32 %v204_v48, %v191_v19 }
  0x89   :  { %v222_v21 = vadd.f32 %v218_v50, %v210_v57 }
  0x8a   :  { %v161_v28 = vpop.permute.xlu0 %160 }
  0x8b   :  { %v166_v31 = vsel %vm162_vm2, %v161_v28, %v155_v18  ;;  %v163_v39 = vsel %vm162_vm2, %v159_v29, %v161_v28 }
  0x8c   :  { %v167_v36 = vmul.f32 %v3533_v30, %v166_v31  ;;  %v170_v43 = vmul.f32 %v3551_v38, %v163_v39 }
  0x8e   :  { %v172_v40 = vpop.permute.xlu0 %171  ;;  %v196_v44 = vrot.slane %v167_v36, %v3473_v7  ;;  %v208_v53 = vrot.slane %v170_v43, %v3473_v7  ;;  %v223_v43 = vadd.f32 %v219_v60, %v211_v0 }
  0x90   :  { %v209_v54 = vmul.f32 %v196_v44, %v191_v19  ;;  %v212_v23 = vmul.f32 %v208_v53, %v191_v19 }
  0x92   :  { %v176_v51 = vpop.permute.xlu0 %175  ;;  %v221_v28 = vadd.f32 %v217_v49, %v209_v54  ;;  %v224_v48 = vadd.f32 %v220_v61, %v212_v23 }
  0x93   :  { %v227_v42 = vpop.permute.xlu1 %226 }
  0x96   :  { %v255_v36 = vpop.permute.xlu0 %254 }
  0x97   :  { %v174_v52 = vpop.permute.xlu1 %173 }
  0x98   :  { %v181_v55 = vsel %vm22_vm5, %v174_v52, %v176_v51  ;;  %v182_v56 = vsel %vm22_vm5, %v172_v40, %v174_v52 }
  0x99   :  { %v184_v58 = vmul.f32 %v3564_v46, %v182_v56  ;;  %v185_v59 = vmul.f32 %v3567_v47, %v181_v55 }
  0x9b   :  { %v232_v5 = vrot.slane %v184_v58, %v3473_v7  ;;  %v236_v18 = vrot.slane %v185_v59, %v3473_v7  ;;  %v178_v20 = vpop.permute.xlu1 %177  ;;  %v131_v58 = vld [vmem:[%s4544_s1 + $0x8] sm:$0xf] }
  0x9c   :  { %v180_v25 = vsel %vm22_vm5, %v176_v51, %v178_v20  ;;  %v183_v22 = vsel %vm22_vm5, %v178_v20, %v172_v40 }
  0x9d   :  { %v186_v29 = vmul.f32 %v3586_v62, %v180_v25  ;;  %v187_v31 = vmul.f32 %v3589_v63, %v183_v22  ;;  %v245_v33 = vmul.f32 %v232_v5, %v227_v42  ;;  %v246_v35 = vmul.f32 %v236_v18, %v227_v42 }
  0x9f   :  { %v240_v37 = vrot.slane %v186_v29, %v3473_v7  ;;  %v244_v39 = vrot.slane %v187_v31, %v3473_v7  ;;  %v249_v41 = vadd.f32 %v245_v33, %v221_v28  ;;  %v250_v19 = vadd.f32 %v246_v35, %v222_v21 }
  0xa1   :  { %v257_v44 = vadd.f32 %v255_v36, %v249_v41  ;;  %v247_v45 = vmul.f32 %v240_v37, %v227_v42  ;;  %v248_v50 = vmul.f32 %v244_v39, %v227_v42  ;;  %v258_v51 = vadd.f32 %v255_v36, %v250_v19  ;;  %v132_v42 = vld [vmem:[%s4544_s1 + $0x10] sm:$0xf] }
  0xa3   :  { %v261_v40 = vmax.f32 %v257_v44, 0.0  ;;  %v251_v49 = vadd.f32 %v247_v45, %v223_v43  ;;  %v252_v52 = vadd.f32 %v248_v50, %v224_v48  ;;  %v262_v55 = vmax.f32 %v258_v51, 0.0 }
  0xa5   :  { %265 = vrot.lane.b32.xlu1 %v261_v40, %s3432_s0  ;;  %v259_v53 = vadd.f32 %v255_v36, %v251_v49  ;;  %v260_v56 = vadd.f32 %v255_v36, %v252_v52  ;;  %v301_v29 = vrot.slane %v261_v40, 4  ;;  %v302_v35 = vrot.slane %v262_v55, 4 }
  0xa7   :  { %v263_v54 = vmax.f32 %v259_v53, 0.0  ;;  %v264_v57 = vmax.f32 %v260_v56, 0.0 }
  0xa9   :  { %269 = vrot.lane.b32.xlu0 %v263_v54, %s3432_s0  ;;  %267 = vrot.lane.b32.xlu1 %v262_v55, %s3432_s0  ;;  %v303_v48 = vrot.slane %v263_v54, 4 }
  0xad   :  { %281 = vrot.lane.b32.xlu0 %v261_v40, %s3434_s13  ;;  %271 = vrot.lane.b32.xlu1 %v264_v57, %s3432_s0 }
  0xb1   :  { %285 = vrot.lane.b32.xlu0 %v263_v54, %s3434_s13  ;;  %283 = vrot.lane.b32.xlu1 %v262_v55, %s3434_s13 }
  0xb5   :  { %287 = vrot.lane.b32.xlu1 %v264_v57, %s3434_s13  ;;  %478 = vperm.xlu0 %3395, %v132_v42  }
  0xb9   :  { %316 = vperm.xlu1 %3396, %v131_v58   ;;  %3397 = vset.pattern.permute.xlu0 %v3433_v16 }
  0xbd   :  { %486 = vperm.xlu1 %3396, %v132_v42  }
  0xc1   :  { %3399 = vset.pattern.permute.xlu1 %v3431_v10 }
 0x117   :  { %v266_v59 = vpop.permute.xlu1 %265 }
 0x11b   :  { %v270_v60 = vpop.permute.xlu0 %269  ;;  %v268_v61 = vpop.permute.xlu1 %267 }
 0x11c   :  { %v275_v0 = vsel %vm162_vm2, %v266_v59, %v268_v61  ;;  %v274_v25 = vsel %vm162_vm2, %v268_v61, %v270_v60 }
 0x11d   :  { %v278_v21 = vmul.f32 %v3538_v32, %v275_v0  ;;  %v279_v36 = vmul.f32 %v3544_v34, %v274_v25 }
 0x11f   :  { %v282_v5 = vpop.permute.xlu0 %281  ;;  %v272_v18 = vpop.permute.xlu1 %271  ;;  %v311_v39 = vsel %vm309_vm9, %v278_v21, %v302_v35  ;;  %v312_v52 = vsel %vm309_vm9, %v279_v36, %v303_v48 }
 0x120   :  { %v276_v20 = vsel %vm162_vm2, %v272_v18, %v266_v59  ;;  %v273_v10 = vsel %vm162_vm2, %v270_v60, %v272_v18 }
 0x121   :  { %v277_v23 = vmul.f32 %v3533_v30, %v276_v20  ;;  %v280_v37 = vmul.f32 %v3551_v38, %v273_v10  ;;  %v304_v38 = vrot.slane %v264_v57, 4 }
 0x123   :  { %v286_v22 = vpop.permute.xlu0 %285  ;;  %v284_v28 = vpop.permute.xlu1 %283  ;;  %v310_v19 = vsel %vm309_vm9, %v277_v23, %v301_v29  ;;  %v313_v51 = vsel %vm309_vm9, %v280_v37, %v304_v38 }
 0x124   :  { %v290_v31 = vsel %vm22_vm5, %v284_v28, %v286_v22  ;;  %v291_v33 = vsel %vm22_vm5, %v282_v5, %v284_v28 }
 0x125   :  { %v293_v32 = vmul.f32 %v3564_v46, %v291_v33  ;;  %v294_v30 = vmul.f32 %v3567_v47, %v290_v31 }
 0x127   :  { %v288_v43 = vpop.permute.xlu1 %287  ;;  %v3235_v44 = vpack.c.bf16 %v294_v30, %v311_v39  ;;  %v3238_v45 = vpack.c.bf16 %v293_v32, %v310_v19 }
 0x128   :  { %v289_v50 = vsel %vm22_vm5, %v286_v22, %v288_v43  ;;  %v292_v34 = vsel %vm22_vm5, %v288_v43, %v282_v5 }
 0x129   :  { %v295_v40 = vmul.f32 %v3586_v62, %v289_v50  ;;  %3237 = vmatprep.subr.msk.bf16.mxu0 %vm3637_vm11, %v3235_v44  ;;  %v296_v49 = vmul.f32 %v3589_v63, %v292_v34 }
 0x12a   :  { %3240 = vmatpush1.bf16.msk.msra.mxu0 %vm3637_vm11, %v3238_v45 }
 0x12b   :  { %v3241_v53 = vpack.c.bf16 %v296_v49, %v313_v51  ;;  %v3244_v54 = vpack.c.bf16 %v295_v40, %v312_v52 }
 0x12d   :  { %3191 = vmatmul.mubr.msk.f32.vlgmr.msra.gmra.mrb[0].mxu0 %vm319_vm12, %v131_v58  ;;  %3243 = vmatprep.subr.msk.bf16.mxu1 %vm3637_vm11, %v3241_v53 }
 0x12e   :  { %3246 = vmatpush1.bf16.msk.msra.mxu1 %vm3637_vm11, %v3244_v54  ;;  %657 = vmatprep.mubr.f32.mxu0 %v4547_v6 }
 0x131   :  { %3194 = vmatmul.mubr.msk.f32.vlgmr.msra.gmra.mrb[0].mxu1 %vm319_vm12, %v131_v58 }
 0x132   :  { %728 = vmatprep.mubr.f32.mxu1 %v4547_v6 }
 0x134   :  { %v479_v56 = vpop.permute.xlu0 %478 }
 0x135   :  { %v481_v57 = vmul.f32 %v479_v56, %v3483_v11  ;;  %v482_v59 = vmul.f32 %v479_v56, %v3491_v13  ;;  %v483_v18 = vmul.f32 %v479_v56, %v3501_v15  ;;  %v484_v23 = vmul.f32 %v479_v56, %v3486_v12 }
 0x136   :  { %v3723_v56 = vsel %vm84_vm15, 1.0, %v4547_v6  ;;  %vm94_vm15 = vcmp.ge.s32.totalorder %v3517_v17, 4 }
 0x138   :  { %v317_v55 = vpop.permute.xlu1 %316 }
 0x13c   :  { %v487_v42 = vpop.permute.xlu1 %486 }
 0x13d   :  { %v489_v0 = vadd.f32 %v487_v42, %v481_v57  ;;  %v490_v21 = vadd.f32 %v487_v42, %v482_v59  ;;  %v491_v29 = vadd.f32 %v487_v42, %v483_v18  ;;  %v492_v13 = vadd.f32 %v487_v42, %v484_v23 }
 0x13e   :  { %v3726_v57 = vsel %vm82_vm0, 1.0, %v4547_v6  ;;  %v3731_v59 = vsel %vm85_vm1, 1.0, %v4547_v6  ;;  %vm97_vm0 = vcmp.ge.s32.totalorder %v3526_v27, 4  ;;  %vm47_vm1 = vcmp.lt.s32.totalorder %v3522_v24, 124 }
 0x200   :  { %v400_v60 = vpop.f32.mrb[0].mxu0 }
 0x201   :  { %v401_v61 = vadd.f32 %v400_v60, %v317_v55  ;;  %v402_v5 = vpop.f32.mrb[1].mxu0  ;;  %v3736_v60 = vsel %vm34_vm3, 1.0, %v4547_v6 }
 0x202   :  { %v403_v20 = vadd.f32 %v402_v5, %v317_v55 }
 0x203   :  { %v493_v58 = vadd.f32 %v489_v0, %v401_v61  ;;  %v3739_v61 = vsel %vm35_vm4, 1.0, %v4547_v6  ;;  %vm46_vm4 = vcmp.lt.s32.totalorder %v3517_v17, 124 }
 0x204   :  { %v494_v25 = vadd.f32 %v490_v21, %v403_v20  ;;  %v471_v10 = vpop.f32.mrb[0].mxu1 }
 0x205   :  { %v497_v22 = vmax.f32 %v493_v58, 0.0  ;;  %v472_v28 = vadd.f32 %v471_v10, %v317_v55  ;;  %v473_v11 = vpop.f32.mrb[1].mxu1 }
 0x206   :  { %v498_v31 = vmax.f32 %v494_v25, 0.0  ;;  %v474_v33 = vadd.f32 %v473_v11, %v317_v55 }
 0x207   :  { %v495_v35 = vadd.f32 %v491_v29, %v472_v28  ;;  %501 = vrot.lane.b32.xlu0 %v497_v22, %s3434_s13 }
 0x208   :  { %v496_v32 = vadd.f32 %v492_v13, %v474_v33  ;;  %503 = vrot.lane.b32.xlu1 %v498_v31, %s3434_s13  ;;  %v3763_v13 = vsel %vm37_vm6, 1.0, %v4547_v6  ;;  %vm49_vm6 = vcmp.lt.s32.totalorder %v3526_v27, 124 }
 0x209   :  { %v499_v15 = vmax.f32 %v495_v35, 0.0 }
 0x20a   :  { %v500_v30 = vmax.f32 %v496_v32, 0.0 }
 0x20b   :  { %505 = vrot.lane.b32.xlu0 %v499_v15, %s3434_s13 }
 0x20c   :  { %507 = vrot.lane.b32.xlu1 %v500_v30, %s3434_s13 }
 0x279   :  { %v502_v12 = vpop.permute.xlu0 %501 }
 0x27a   :  { %v504_v36 = vpop.permute.xlu1 %503 }
 0x27b   :  { %v511_v37 = vsel %vm22_vm5, %v502_v12, %v504_v36 }
 0x27c   :  { %v513_v39 = vmul.f32 %v3564_v46, %v511_v37 }
 0x27d   :  { %v506_v19 = vpop.permute.xlu0 %505 }
 0x27e   :  { %v3673_v43 = vmax.f32 %v497_v22, %v513_v39  ;;  %v510_v44 = vsel %vm22_vm5, %v504_v36, %v506_v19  ;;  %v508_v45 = vpop.permute.xlu1 %507 }
 0x27f   :  { %v514_v48 = vmul.f32 %v3567_v47, %v510_v44  ;;  %v509_v50 = vsel %vm22_vm5, %v506_v19, %v508_v45  ;;  %v512_v34 = vsel %vm22_vm5, %v508_v45, %v502_v12  ;;  %vm36_vm5 = vcmp.lt.s32.totalorder %v3524_v26, 126 }
 0x280   :  { %v515_v38 = vmul.f32 %v3586_v62, %v509_v50  ;;  %524 = vrot.lane.b32.xlu0 %v3673_v43, %s3436_s18  ;;  %v516_v40 = vmul.f32 %v3589_v63, %v512_v34  ;;  %v521_v62 = vld [vmem:[%s4544_s1 + $0x18] sm:$0xff]  ;;  %v562_v23 = vrot.slane %v3673_v43, 4  ;;  %v3757_v29 = vsel %vm36_vm5, 1.0, %v4547_v6 }
 0x281   :  { %v3685_v46 = vmax.f32 %v498_v31, %v514_v48  ;;  %vm48_vm5 = vcmp.lt.s32.totalorder %v3524_v26, 124 }
 0x282   :  { %v3688_v49 = vmax.f32 %v499_v15, %v515_v38  ;;  %v3694_v47 = vmax.f32 %v500_v30, %v516_v40 }
 0x283   :  { %526 = vrot.lane.b32.xlu1 %v3685_v46, %s3436_s18  ;;  %v563_v22 = vrot.slane %v3685_v46, 4 }
 0x284   :  { %528 = vrot.lane.b32.xlu0 %v3688_v49, %s3436_s18  ;;  %v565_v32 = vrot.slane %v3694_v47, 4  ;;  %v564_v30 = vrot.slane %v3688_v49, 4 }
 0x287   :  { %530 = vrot.lane.b32.xlu1 %v3694_v47, %s3436_s18 }
 0x288   :  { %541 = vrot.lane.b32.xlu0 %v3673_v43, %s3437_s19 }
 0x28b   :  { %543 = vrot.lane.b32.xlu1 %v3685_v46, %s3437_s19 }
 0x28c   :  { %545 = vrot.lane.b32.xlu0 %v3688_v49, %s3437_s19 }
 0x28f   :  { %547 = vrot.lane.b32.xlu1 %v3694_v47, %s3437_s19 }
 0x290   :  { %576 = vperm.xlu0 %3397, %v521_v62  }
 0x294   :  { %3398 = vset.pattern.permute.xlu0 %v3428_v2  ;;  %v3718_v2 = vsel %vm83_vm13, 1.0, %v4547_v6  ;;  %vm96_vm13 = vcmp.ge.s32.totalorder %v3524_v26, 4 }
 0x2f2   :  { %v525_v63 = vpop.permute.xlu0 %524 }
 0x2f5   :  { %v527_v51 = vpop.permute.xlu1 %526 }
 0x2f6   :  { %v529_v52 = vpop.permute.xlu0 %528  ;;  %v535_v54 = vsel %vm532_vm14, %v525_v63, %v527_v51 }
 0x2f7   :  { %v538_v0 = vmul.f32 %v3718_v2, %v535_v54  ;;  %v534_v5 = vsel %vm532_vm14, %v527_v51, %v529_v52 }
 0x2f8   :  { %v539_v11 = vmul.f32 %v3723_v56, %v534_v5 }
 0x2f9   :  { %v531_v53 = vpop.permute.xlu1 %530  ;;  %v571_v35 = vsel %vm309_vm9, %v538_v0, %v563_v22 }
 0x2fa   :  { %v542_v55 = vpop.permute.xlu0 %541  ;;  %v536_v42 = vsel %vm532_vm14, %v531_v53, %v525_v63  ;;  %v533_v18 = vsel %vm532_vm14, %v529_v52, %v531_v53  ;;  %v572_v48 = vsel %vm309_vm9, %v539_v11, %v564_v30 }
 0x2fb   :  { %v537_v21 = vmul.f32 %v3726_v57, %v536_v42  ;;  %v540_v31 = vmul.f32 %v3731_v59, %v533_v18 }
 0x2fd   :  { %v544_v20 = vpop.permute.xlu1 %543  ;;  %v570_v12 = vsel %vm309_vm9, %v537_v21, %v562_v23  ;;  %v573_v50 = vsel %vm309_vm9, %v540_v31, %v565_v32  ;;  %v523_v21 = vld [vmem:[%s4544_s1 + $0x28] sm:$0xff]  ;;  %v3438_v23 = vmov 3  }
 0x2fe   :  { %v552_v58 = vsel %vm34_vm3, %v542_v55, %v544_v20  ;;  %v546_v25 = vpop.permute.xlu0 %545 }
 0x2ff   :  { %v554_v10 = vmul.f32 %v3736_v60, %v552_v58  ;;  %v551_v28 = vsel %vm34_vm3, %v544_v20, %v546_v25  ;;  %v522_v58 = vld [vmem:[%s4544_s1 + $0x20] sm:$0xff] }
 0x300   :  { %v555_v33 = vmul.f32 %v3739_v61, %v551_v28 }
 0x301   :  { %v548_v15 = vpop.permute.xlu1 %547  ;;  %v3250_v19 = vpack.c.bf16 %v554_v10, %v570_v12 }
 0x302   :  { %v3247_v36 = vpack.c.bf16 %v555_v33, %v571_v35  ;;  %v550_v37 = vsel %vm34_vm3, %v546_v25, %v548_v15  ;;  %v553_v39 = vsel %vm34_vm3, %v548_v15, %v542_v55 }
 0x303   :  { %v556_v44 = vmul.f32 %v3757_v29, %v550_v37  ;;  %v557_v45 = vmul.f32 %v3763_v13, %v553_v39 }
 0x304   :  { %3249 = vmatprep.subr.msk.bf16.mxu0 %vm3637_vm11, %v3247_v36 }
 0x305   :  { %v3253_v34 = vpack.c.bf16 %v557_v45, %v573_v50  ;;  %v3256_v38 = vpack.c.bf16 %v556_v44, %v572_v48  ;;  %3252 = vmatpush1.bf16.msk.msra.mxu0 %vm3637_vm11, %v3250_v19 }
 0x307   :  { %3255 = vmatprep.subr.msk.bf16.mxu1 %vm3637_vm11, %v3253_v34 }
 0x308   :  { %3197 = vmatmul.mubr.msk.f32.vlgmr.msra.gmra.mrb[2].mxu0 %vm319_vm12, %v521_v62  ;;  %3258 = vmatpush1.bf16.msk.msra.mxu1 %vm3637_vm11, %v3256_v38 }
 0x309   :  { %843 = vmatprep.mubr.f32.mxu0 %v4547_v6 }
 0x30b   :  { %3200 = vmatmul.mubr.msk.f32.vlgmr.msra.gmra.mrb[2].mxu1 %vm319_vm12, %v521_v62 }
 0x30c   :  { %914 = vmatprep.mubr.f32.mxu1 %v4547_v6 }
 0x30f   :  { %v577_v40 = vpop.permute.xlu0 %576 }
 0x3db   :  { %v659_v63 = vpop.f32.mrb[2].mxu0 }
 0x3dc   :  { %v661_v51 = vpop.f32.mrb[3].mxu0  ;;  %v660_v52 = vadd.f32 %v659_v63, %v577_v40 }
 0x3dd   :  { %v662_v53 = vadd.f32 %v661_v51, %v577_v40 }
 0x3de   :  { %v730_v54 = vpop.f32.mrb[2].mxu1  ;;  %v735_v55 = vmax.f32 %v660_v52, 0.0 }
 0x3df   :  { %v731_v42 = vadd.f32 %v730_v54, %v577_v40  ;;  %v732_v0 = vpop.f32.mrb[3].mxu1  ;;  %v736_v18 = vmax.f32 %v662_v53, 0.0 }
 0x3e0   :  { %739 = vrot.lane.b32.xlu1 %v735_v55, %s3436_s18  ;;  %v733_v20 = vadd.f32 %v732_v0, %v577_v40  ;;  %v957_v0 = vrot.slane %v3685_v46, %v3476_v8 }
 0x3e1   :  { %v737_v5 = vmax.f32 %v731_v42, 0.0 }
 0x3e2   :  { %v738_v62 = vmax.f32 %v733_v20, 0.0  ;;  %v981_v20 = vrot.slane %v3673_v43, %v3494_v14 }
 0x3e3   :  { %743 = vrot.lane.b32.xlu0 %v737_v5, %s3436_s18 }
 0x3e4   :  { %741 = vrot.lane.b32.xlu1 %v736_v18, %s3436_s18 }
 0x3e7   :  { %755 = vrot.lane.b32.xlu0 %v735_v55, %s3437_s19 }
 0x3e8   :  { %745 = vrot.lane.b32.xlu1 %v738_v62, %s3436_s18 }
 0x3eb   :  { %759 = vrot.lane.b32.xlu0 %v737_v5, %s3437_s19 }
 0x3ec   :  { %757 = vrot.lane.b32.xlu1 %v736_v18, %s3437_s19 }
 0x3ef   :  { %923 = vperm.xlu0 %3398, %v523_v21  }
 0x3f0   :  { %761 = vrot.lane.b32.xlu1 %v738_v62, %s3437_s19 }
 0x3f3   :  { %3401 = vset.pattern.permute.xlu0 %v3438_v23 }
 0x3f4   :  { %1003 = vperm.xlu0 %3401, %v523_v21   ;;  %947 = vperm.xlu1 %3399, %v523_v21  }
 0x3f8   :  { %3400 = vset.pattern.permute.xlu1 %v3429_v4  ;;  %3403 = vset.pattern.permute.xlu0 %v3433_v16 }
 0x3f9   :  { %975 = vperm.xlu1 %3400, %v523_v21  }
 0x3fd   :  { %3402 = vset.pattern.permute.xlu1 %v3433_v16 }
 0x3fe   :  { %773 = vperm.xlu1 %3402, %v522_v58  }
 0x402   :  { %1031 = vperm.xlu1 %3402, %v523_v21   ;;  %v961_v21 = vrot.slane %v3688_v49, %v3476_v8 }
 0x452   :  { %v740_v25 = vpop.permute.xlu1 %739 }
 0x455   :  { %v744_v10 = vpop.permute.xlu0 %743 }
 0x456   :  { %v742_v22 = vpop.permute.xlu1 %741 }
 0x457   :  { %v749_v28 = vsel %vm532_vm14, %v740_v25, %v742_v22  ;;  %v748_v4 = vsel %vm532_vm14, %v742_v22, %v744_v10  ;;  %v965_v22 = vrot.slane %v3694_v47, %v3476_v8 }
 0x458   :  { %v752_v11 = vmul.f32 %v3718_v2, %v749_v28  ;;  %v753_v32 = vmul.f32 %v3723_v56, %v748_v4 }
 0x459   :  { %v756_v31 = vpop.permute.xlu0 %755 }
 0x45a   :  { %v746_v33 = vpop.permute.xlu1 %745  ;;  %v3259_v35 = vpack.c.bf16 %v736_v18, %v752_v11  ;;  %v3265_v44 = vpack.c.bf16 %v737_v5, %v753_v32  ;;  %v929_v5 = vrot.slane %v3673_v43, %v3473_v7  ;;  %v941_v32 = vrot.slane %v3694_v47, %v3473_v7 }
 0x45b   :  { %v747_v16 = vsel %vm532_vm14, %v744_v10, %v746_v33  ;;  %v750_v15 = vsel %vm532_vm14, %v746_v33, %v740_v25  ;;  %v937_v25 = vrot.slane %v3688_v49, %v3473_v7 }
 0x45c   :  { %v751_v30 = vmul.f32 %v3726_v57, %v750_v15  ;;  %v754_v12 = vmul.f32 %v3731_v59, %v747_v16  ;;  %3260 = vmatprep.subr.bf16.mxu0 %v3259_v35  ;;  %v993_v15 = vrot.slane %v3694_v47, %v3494_v14 }
 0x45d   :  { %v760_v36 = vpop.permute.xlu0 %759 }
 0x45e   :  { %v3261_v37 = vpack.c.bf16 %v735_v55, %v751_v30  ;;  %v758_v39 = vpop.permute.xlu1 %757  ;;  %v3263_v19 = vpack.c.bf16 %v738_v62, %v754_v12  ;;  %v953_v55 = vrot.slane %v3673_v43, %v3476_v8  ;;  %v933_v62 = vrot.slane %v3685_v46, %v3473_v7 }
 0x45f   :  { %v764_v45 = vsel %vm34_vm3, %v758_v39, %v760_v36  ;;  %v765_v48 = vsel %vm34_vm3, %v756_v31, %v758_v39 }
 0x460   :  { %3262 = vmatpush1.bf16.msra.mxu0 %v3261_v37  ;;  %3264 = vmatprep.subr.bf16.mxu1 %v3263_v19  ;;  %v768_v50 = vmul.f32 %v3739_v61, %v764_v45  ;;  %v767_v34 = vmul.f32 %v3736_v60, %v765_v48  ;;  %v1009_v19 = vrot.slane %v3673_v43, %v3479_v9 }
 0x461   :  { %3266 = vmatpush1.bf16.msra.mxu1 %v3265_v44  ;;  %v1013_v48 = vrot.slane %v3685_v46, %v3479_v9 }
 0x462   :  { %783 = vmatprep.subr.mxu0 %v768_v50  ;;  %v762_v38 = vpop.permute.xlu1 %761 }
 0x463   :  { %v763_v40 = vsel %vm34_vm3, %v760_v36, %v762_v38  ;;  %v766_v63 = vsel %vm34_vm3, %v762_v38, %v756_v31  ;;  %v989_v31 = vrot.slane %v3688_v49, %v3494_v14 }
 0x464   :  { %v769_v51 = vmul.f32 %v3757_v29, %v763_v40  ;;  %784 = vmatpush1.msra.mxu0 %v767_v34  ;;  %v770_v52 = vmul.f32 %v3763_v13, %v766_v63 }
 0x465   :  { %3201 = vmatmul.mubr.msk.f32.vlgmr.msra.gmra.mrb[4].mxu0 %vm776_vm7, %v522_v58 }
 0x466   :  { %854 = vmatprep.subr.mxu1 %v770_v52  ;;  %1184 = vmatprep.mubr.f32.mxu0 %v4547_v6  ;;  %v1021_v52 = vrot.slane %v3694_v47, %v3479_v9 }
 0x467   :  { %855 = vmatpush1.msra.mxu1 %v769_v51 }
 0x468   :  { %3202 = vmatmul.mubr.msk.f32.vlgmr.msra.gmra.mrb[4].mxu1 %vm776_vm7, %v522_v58  ;;  %v985_v58 = vrot.slane %v3685_v46, %v3494_v14  ;;  %v1017_v14 = vrot.slane %v3688_v49, %v3479_v9 }
 0x469   :  { %1261 = vmatprep.mubr.f32.mxu1 %v4547_v6 }
 0x46e   :  { %v924_v42 = vpop.permute.xlu0 %923 }
 0x46f   :  { %v942_v10 = vmul.f32 %v929_v5, %v924_v42  ;;  %v943_v4 = vmul.f32 %v933_v62, %v924_v42  ;;  %v944_v12 = vmul.f32 %v937_v25, %v924_v42  ;;  %v945_v39 = vmul.f32 %v941_v32, %v924_v42 }
 0x473   :  { %v948_v53 = vpop.permute.xlu1 %947  ;;  %v1004_v36 = vpop.permute.xlu0 %1003 }
 0x474   :  { %v966_v18 = vmul.f32 %v953_v55, %v948_v53  ;;  %v967_v23 = vmul.f32 %v957_v0, %v948_v53  ;;  %v968_v11 = vmul.f32 %v961_v21, %v948_v53  ;;  %v969_v16 = vmul.f32 %v965_v22, %v948_v53 }
 0x475   :  { %v1022_v34 = vmul.f32 %v1009_v19, %v1004_v36  ;;  %v1023_v40 = vmul.f32 %v1013_v48, %v1004_v36  ;;  %v1025_v0 = vmul.f32 %v1021_v52, %v1004_v36 }
 0x476   :  { %v970_v30 = vadd.f32 %v966_v18, %v942_v10  ;;  %v971_v8 = vadd.f32 %v967_v23, %v943_v4  ;;  %v972_v7 = vadd.f32 %v968_v11, %v944_v12  ;;  %v973_v38 = vadd.f32 %v969_v16, %v945_v39 }
 0x478   :  { %v976_v54 = vpop.permute.xlu1 %975 }
 0x479   :  { %v994_v28 = vmul.f32 %v981_v20, %v976_v54  ;;  %v995_v33 = vmul.f32 %v985_v58, %v976_v54  ;;  %v996_v37 = vmul.f32 %v989_v31, %v976_v54  ;;  %v997_v44 = vmul.f32 %v993_v15, %v976_v54 }
 0x47a   :  { %v1024_v54 = vmul.f32 %v1017_v14, %v1004_v36  ;;  %v1066_v14 = vld [vmem:[%s4544_s1 + $0x30] sm:$0xff] }
 0x47b   :  { %v998_v45 = vadd.f32 %v994_v28, %v970_v30  ;;  %v999_v50 = vadd.f32 %v995_v33, %v971_v8  ;;  %v1000_v51 = vadd.f32 %v996_v37, %v972_v7  ;;  %v1001_v43 = vadd.f32 %v997_v44, %v973_v38 }
 0x47d   :  { %v774_v35 = vpop.permute.xlu1 %773  ;;  %v1026_v53 = vadd.f32 %v1022_v34, %v998_v45  ;;  %v1027_v42 = vadd.f32 %v1023_v40, %v999_v50  ;;  %v1028_v21 = vadd.f32 %v1024_v54, %v1000_v51  ;;  %v1029_v58 = vadd.f32 %v1025_v0, %v1001_v43  ;;  %v1067_v40 = vld [vmem:[%s4544_s1 + $0x38] sm:$0xff] }
 0x47e   :  { %v3915_v51 = vsel %vm95_vm8, 1.0, %v4547_v6  ;;  %v3929_v0 = vsel %vm94_vm15, 1.0, %v4547_v6  ;;  %vm1356_vm8 = vcmask 392192   ;;  %vm59_vm15 = vcmp.lt.s32.totalorder %v3522_v24, 120 }
 0x481   :  { %v1032_v63 = vpop.permute.xlu1 %1031 }
 0x482   :  { %v1034_v5 = vadd.f32 %v1032_v63, %v1026_v53  ;;  %v1035_v62 = vadd.f32 %v1032_v63, %v1027_v42  ;;  %v1036_v22 = vadd.f32 %v1032_v63, %v1028_v21  ;;  %v1037_v4 = vadd.f32 %v1032_v63, %v1029_v58 }
 0x538   :  { %v845_v55 = vpop.f32.mrb[4].mxu0 }
 0x539   :  { %v846_v46 = vadd.f32 %v845_v55, %v774_v35  ;;  %v847_v18 = vpop.f32.mrb[5].mxu0  ;;  %v3924_v55 = vsel %vm96_vm13, 1.0, %v4547_v6  ;;  %vm1525_vm13 = vcmask 64512  }
 0x53a   :  { %v848_v20 = vadd.f32 %v847_v18, %v774_v35 }
 0x53b   :  { %v1038_v23 = vadd.f32 %v1034_v5, %v846_v46  ;;  %v916_v49 = vpop.f32.mrb[4].mxu1  ;;  %v3932_v46 = vsel %vm97_vm0, 1.0, %v4547_v6  ;;  %vm58_vm0 = vcmp.lt.s32.totalorder %v3517_v17, 120 }
 0x53c   :  { %v1039_v25 = vadd.f32 %v1035_v62, %v848_v20  ;;  %v917_v10 = vadd.f32 %v916_v49, %v774_v35  ;;  %v918_v28 = vpop.f32.mrb[5].mxu1 }
 0x53d   :  { %v1042_v9 = vmax.f32 %v1038_v23, 0.0  ;;  %v919_v47 = vadd.f32 %v918_v28, %v774_v35 }
 0x53e   :  { %v1043_v11 = vmax.f32 %v1039_v25, 0.0  ;;  %v1040_v31 = vadd.f32 %v1036_v22, %v917_v10  ;;  %v3945_v25 = vsel %vm47_vm1, 1.0, %v4547_v6  ;;  %vm60_vm1 = vcmp.lt.s32.totalorder %v3524_v26, 120 }
 0x53f   :  { %v1041_v33 = vadd.f32 %v1037_v4, %v919_v47  ;;  %1046 = vrot.lane.b32.xlu0 %v1042_v9, %s3437_s19  ;;  %v3955_v47 = vsel %vm46_vm4, 1.0, %v4547_v6 }
 0x540   :  { %v1044_v32 = vmax.f32 %v1040_v31, 0.0  ;;  %1048 = vrot.lane.b32.xlu1 %v1043_v11, %s3437_s19 }
 0x541   :  { %v1045_v16 = vmax.f32 %v1041_v33, 0.0 }
 0x543   :  { %1050 = vrot.lane.b32.xlu0 %v1044_v32, %s3437_s19 }
 0x544   :  { %1052 = vrot.lane.b32.xlu1 %v1045_v16, %s3437_s19 }
 0x5b1   :  { %v1047_v15 = vpop.permute.xlu0 %1046 }
 0x5b2   :  { %v1049_v30 = vpop.permute.xlu1 %1048 }
 0x5b3   :  { %v1056_v12 = vsel %vm34_vm3, %v1047_v15, %v1049_v30 }
 0x5b4   :  { %v1058_v35 = vmul.f32 %v3736_v60, %v1056_v12 }
 0x5b5   :  { %v1051_v36 = vpop.permute.xlu0 %1050 }
 0x5b6   :  { %v3873_v37 = vmax.f32 %v1042_v9, %v1058_v35  ;;  %v1055_v8 = vsel %vm34_vm3, %v1049_v30, %v1051_v36  ;;  %v1053_v39 = vpop.permute.xlu1 %1052 }
 0x5b7   :  { %v1059_v19 = vmul.f32 %v3739_v61, %v1055_v8  ;;  %v1054_v44 = vsel %vm34_vm3, %v1051_v36, %v1053_v39  ;;  %v1057_v45 = vsel %vm34_vm3, %v1053_v39, %v1047_v15 }
 0x5b8   :  { %v1060_v48 = vmul.f32 %v3757_v29, %v1054_v44  ;;  %1072 = vrot.lane.b32.xlu0 %v3873_v37, %s3439_s26  ;;  %v1061_v7 = vmul.f32 %v3763_v13, %v1057_v45 }
 0x5b9   :  { %v3885_v50 = vmax.f32 %v1043_v11, %v1059_v19 }
 0x5ba   :  { %v3888_v34 = vmax.f32 %v1044_v32, %v1060_v48  ;;  %v3894_v38 = vmax.f32 %v1045_v16, %v1061_v7  ;;  %v3963_v32 = vsel %vm48_vm5, 1.0, %v4547_v6  ;;  %v3966_v16 = vsel %vm49_vm6, 1.0, %v4547_v6 }
 0x5bb   :  { %1074 = vrot.lane.b32.xlu1 %v3885_v50, %s3439_s26  ;;  %vm61_vm5 = vcmp.lt.s32.totalorder %v3526_v27, 120  ;;  %vm1787_vm6 = vcmask 261120  }
 0x5bc   :  { %1076 = vrot.lane.b32.xlu0 %v3888_v34, %s3439_s26 }
 0x5bf   :  { %1078 = vrot.lane.b32.xlu1 %v3894_v38, %s3439_s26 }
 0x5c0   :  { %1089 = vrot.lane.b32.xlu0 %v3873_v37, %s3440_s27 }
 0x5c3   :  { %1091 = vrot.lane.b32.xlu1 %v3885_v50, %s3440_s27 }
 0x5c4   :  { %1093 = vrot.lane.b32.xlu0 %v3888_v34, %s3440_s27 }
 0x5c7   :  { %1095 = vrot.lane.b32.xlu1 %v3894_v38, %s3440_s27 }
 0x5c8   :  { %1108 = vperm.xlu0 %3403, %v1066_v14  }
 0x5cb   :  { %1113 = vperm.xlu1 %3402, %v1067_v40  }
 0x62a   :  { %v1073_v63 = vpop.permute.xlu0 %1072 }
 0x62d   :  { %v1075_v52 = vpop.permute.xlu1 %1074 }
 0x62e   :  { %v1083_v53 = vsel %vm1080_vm10, %v1073_v63, %v1075_v52  ;;  %v1077_v43 = vpop.permute.xlu0 %1076 }
 0x62f   :  { %v1086_v54 = vmul.f32 %v3915_v51, %v1083_v53  ;;  %v1082_v42 = vsel %vm1080_vm10, %v1075_v52, %v1077_v43 }
 0x630   :  { %v1087_v20 = vmul.f32 %v3924_v55, %v1082_v42 }
 0x631   :  { %v1079_v5 = vpop.permute.xlu1 %1078  ;;  %v3267_v18 = vpack.c.bf16 %v3885_v50, %v1086_v54 }
 0x632   :  { %v1081_v62 = vsel %vm1080_vm10, %v1077_v43, %v1079_v5  ;;  %v1084_v21 = vsel %vm1080_vm10, %v1079_v5, %v1073_v63  ;;  %v1090_v23 = vpop.permute.xlu0 %1089  ;;  %v3273_v9 = vpack.c.bf16 %v3888_v34, %v1087_v20 }
 0x633   :  { %v1085_v49 = vmul.f32 %v3929_v0, %v1084_v21  ;;  %v1088_v58 = vmul.f32 %v3932_v46, %v1081_v62  ;;  %3268 = vmatprep.subr.bf16.mxu0 %v3267_v18 }
 0x635   :  { %v3269_v10 = vpack.c.bf16 %v3873_v37, %v1085_v49  ;;  %v1092_v22 = vpop.permute.xlu1 %1091  ;;  %v3271_v28 = vpack.c.bf16 %v3894_v38, %v1088_v58 }
 0x636   :  { %v1100_v4 = vsel %vm46_vm4, %v1090_v23, %v1092_v22  ;;  %v1094_v11 = vpop.permute.xlu0 %1093 }
 0x637   :  { %v1099_v31 = vsel %vm46_vm4, %v1092_v22, %v1094_v11  ;;  %3270 = vmatpush1.bf16.msra.mxu0 %v3269_v10  ;;  %3272 = vmatprep.subr.bf16.mxu1 %v3271_v28  ;;  %v1102_v15 = vmul.f32 %v3955_v47, %v1100_v4 }
 0x638   :  { %v1103_v33 = vmul.f32 %v3945_v25, %v1099_v31  ;;  %3274 = vmatpush1.bf16.msra.mxu1 %v3273_v9 }
 0x639   :  { %v1096_v30 = vpop.permute.xlu1 %1095 }
 0x63a   :  { %v1098_v12 = vsel %vm46_vm4, %v1094_v11, %v1096_v30  ;;  %v1101_v35 = vsel %vm46_vm4, %v1096_v30, %v1090_v23  ;;  %1124 = vmatprep.subr.mxu0 %v1103_v33  ;;  %v4048_v30 = vld [vmem:[%s4544_s1 + $0x48] sm:$0xff] }
 0x63b   :  { %v1104_v36 = vmul.f32 %v3963_v32, %v1098_v12  ;;  %v1105_v8 = vmul.f32 %v3966_v16, %v1101_v35  ;;  %1125 = vmatpush1.msra.mxu0 %v1102_v15  ;;  %v4040_v15 = vld [vmem:[%s4544_s1 + $0x40] sm:$0xff]  ;;  %v4053_v12 = vld [vmem:[%s4544_s1 + $0x50] sm:$0xff]  ;;  %v4060_v35 = vld [vmem:[%s4544_s1 + $0x58] sm:$0xff] }
 0x63c   :  { %3203 = vmatmul.mubr.msk.f32.vlgmr.msra.gmra.mrb[6].mxu0 %vm776_vm7, %v1066_v14 }
 0x63d   :  { %1201 = vmatprep.subr.mxu1 %v1105_v8  ;;  %1190 = vmatprep.mubr.f32.mxu0 %v4547_v6 }
 0x63e   :  { %1202 = vmatpush1.msra.mxu1 %v1104_v36 }
 0x63f   :  { %3205 = vmatmul.mubr.msk.f32.vlgmr.msra.gmra.mrb[6].mxu1 %vm776_vm7, %v1066_v14 }
 0x640   :  { %3204 = vmatmul.mubr.msk.f32.gmra.mrb[8].mxu0 %vm776_vm7, %v1067_v40  ;;  %1267 = vmatprep.mubr.f32.mxu1 %v4547_v6 }
 0x641   :  { %1425 = vmatprep.mubr.f32.mxu0 %v4547_v6 }
 0x643   :  { %3206 = vmatmul.mubr.msk.f32.gmra.mrb[8].mxu1 %vm776_vm7, %v1067_v40 }
 0x644   :  { %1502 = vmatprep.mubr.f32.mxu1 %v4547_v6 }
 0x647   :  { %v1109_v39 = vpop.permute.xlu0 %1108 }
 0x64a   :  { %v1114_v48 = vpop.permute.xlu1 %1113 }
 0x70f   :  { %v1186_v19 = vpop.f32.mrb[6].mxu0 }
 0x710   :  { %v1188_v44 = vpop.f32.mrb[7].mxu0  ;;  %v1187_v45 = vadd.f32 %v1186_v19, %v1109_v39 }
 0x711   :  { %v1189_v52 = vadd.f32 %v1188_v44, %v1109_v39 }
 0x712   :  { %v1263_v7 = vpop.f32.mrb[6].mxu1  ;;  %v3983_v63 = vmax.f32 %v1187_v45, 0.0 }
 0x713   :  { %v1264_v14 = vadd.f32 %v1263_v7, %v1109_v39  ;;  %v1192_v53 = vpop.f32.mrb[8].mxu0  ;;  %v1265_v43 = vpop.f32.mrb[7].mxu1  ;;  %v3991_v21 = vmax.f32 %v1189_v52, 0.0 }
 0x714   :  { %v1193_v54 = vadd.f32 %v1192_v53, %v1114_v48  ;;  %v1194_v42 = vpop.f32.mrb[9].mxu0  ;;  %1282 = vrot.lane.b32.xlu1 %v3983_v63, %s3439_s26  ;;  %v1266_v20 = vadd.f32 %v1265_v43, %v1109_v39 }
 0x715   :  { %v3987_v40 = vmax.f32 %v1264_v14, 0.0  ;;  %v1195_v5 = vadd.f32 %v1194_v42, %v1114_v48 }
 0x716   :  { %v3989_v18 = vmax.f32 %v1193_v54, 0.0  ;;  %v1269_v62 = vpop.f32.mrb[8].mxu1  ;;  %v4005_v4 = vmax.f32 %v1266_v20, 0.0 }
 0x717   :  { %v3993_v23 = vmax.f32 %v1195_v5, 0.0  ;;  %v1270_v49 = vadd.f32 %v1269_v62, %v1114_v48  ;;  %v1271_v58 = vpop.f32.mrb[9].mxu1 }
 0x718   :  { %v1272_v10 = vadd.f32 %v1271_v58, %v1114_v48  ;;  %1284 = vrot.lane.b32.xlu0 %v3989_v18, %s3439_s26  ;;  %1290 = vrot.lane.b32.xlu1 %v3987_v40, %s3439_s26 }
 0x719   :  { %v4001_v28 = vmax.f32 %v1270_v49, 0.0  ;;  %v3279_v9 = vpack.c.bf16 %v3993_v23, %v3991_v21 }
 0x71a   :  { %v4007_v11 = vmax.f32 %v1272_v10, 0.0 }
 0x71c   :  { %1292 = vrot.lane.b32.xlu0 %v4001_v28, %s3439_s26  ;;  %1314 = vrot.lane.b32.xlu1 %v3983_v63, %s3440_s27  ;;  %v3291_v33 = vpack.c.bf16 %v4007_v11, %v4005_v4 }
 0x720   :  { %1316 = vrot.lane.b32.xlu0 %v3989_v18, %s3440_s27  ;;  %1322 = vrot.lane.b32.xlu1 %v3987_v40, %s3440_s27 }
 0x724   :  { %1324 = vrot.lane.b32.xlu0 %v4001_v28, %s3440_s27  ;;  %1286 = vrot.lane.b32.xlu1 %v3991_v21, %s3439_s26 }
 0x728   :  { %1288 = vrot.lane.b32.xlu0 %v3993_v23, %s3439_s26  ;;  %1294 = vrot.lane.b32.xlu1 %v4005_v4, %s3439_s26 }
 0x72c   :  { %1296 = vrot.lane.b32.xlu0 %v4007_v11, %s3439_s26  ;;  %1318 = vrot.lane.b32.xlu1 %v3991_v21, %s3440_s27 }
 0x730   :  { %1320 = vrot.lane.b32.xlu0 %v3993_v23, %s3440_s27  ;;  %1326 = vrot.lane.b32.xlu1 %v4005_v4, %s3440_s27 }
 0x734   :  { %1328 = vrot.lane.b32.xlu0 %v4007_v11, %s3440_s27  ;;  %1348 = vperm.xlu1 %3402, %v4040_v15  }
 0x738   :  { %1353 = vperm.xlu0 %3403, %v4048_v30   ;;  %1517 = vperm.xlu1 %3402, %v4053_v12  }
 0x73c   :  { %1522 = vperm.xlu0 %3403, %v4060_v35  }
 0x786   :  { %v1283_v36 = vpop.permute.xlu1 %1282 }
 0x78a   :  { %v1291_v8 = vpop.permute.xlu1 %1290  ;;  %v1285_v39 = vpop.permute.xlu0 %1284 }
 0x78e   :  { %v1315_v19 = vpop.permute.xlu1 %1314  ;;  %v1293_v44 = vpop.permute.xlu0 %1292 }
 0x792   :  { %v1323_v45 = vpop.permute.xlu1 %1322  ;;  %v1317_v48 = vpop.permute.xlu0 %1316 }
 0x796   :  { %v1287_v7 = vpop.permute.xlu1 %1286  ;;  %v1325_v52 = vpop.permute.xlu0 %1324 }
 0x797   :  { %v1302_v14 = vsel %vm1080_vm10, %v1283_v36, %v1287_v7  ;;  %v1300_v6 = vsel %vm1080_vm10, %v1287_v7, %v1291_v8 }
 0x798   :  { %v1307_v42 = vmul.f32 %v3915_v51, %v1302_v14  ;;  %v1308_v7 = vmul.f32 %v3924_v55, %v1300_v6 }
 0x79a   :  { %v1295_v53 = vpop.permute.xlu1 %1294  ;;  %v1289_v43 = vpop.permute.xlu0 %1288 }
 0x79b   :  { %v1303_v54 = vsel %vm1080_vm10, %v1285_v39, %v1289_v43  ;;  %v1304_v5 = vsel %vm1080_vm10, %v1295_v53, %v1283_v36  ;;  %v1298_v62 = vsel %vm1080_vm10, %v1291_v8, %v1295_v53  ;;  %v1301_v49 = vsel %vm1080_vm10, %v1289_v43, %v1293_v44 }
 0x79c   :  { %v1311_v20 = vmul.f32 %v3915_v51, %v1303_v54  ;;  %v1306_v31 = vmul.f32 %v3929_v0, %v1304_v5  ;;  %v1309_v54 = vmul.f32 %v3932_v46, %v1298_v62  ;;  %v1312_v53 = vmul.f32 %v3924_v55, %v1301_v49 }
 0x79e   :  { %v1319_v58 = vpop.permute.xlu1 %1318  ;;  %v1297_v10 = vpop.permute.xlu0 %1296  ;;  %v3275_v1 = vpack.c.bf16 %v1311_v20, %v1307_v42  ;;  %v3289_v49 = vpack.c.bf16 %v1312_v53, %v1308_v7 }
 0x79f   :  { %v1299_v14 = vsel %vm1080_vm10, %v1293_v44, %v1297_v10  ;;  %v1305_v36 = vsel %vm1080_vm10, %v1297_v10, %v1285_v39  ;;  %v1332_v8 = vsel %vm46_vm4, %v1319_v58, %v1323_v45  ;;  %v1334_v10 = vsel %vm46_vm4, %v1315_v19, %v1319_v58 }
 0x7a0   :  { %v1310_v43 = vmul.f32 %v3929_v0, %v1305_v36  ;;  %v1313_v22 = vmul.f32 %v3932_v46, %v1299_v14  ;;  %3276 = vmatprep.subr.bf16.mxu0 %v3275_v1  ;;  %v1339_v1 = vmul.f32 %v3945_v25, %v1332_v8 }
 0x7a2   :  { %v3277_v42 = vpack.c.bf16 %v1310_v43, %v1306_v31  ;;  %v1327_v5 = vpop.permute.xlu1 %1326  ;;  %v1321_v44 = vpop.permute.xlu0 %1320  ;;  %v3287_v20 = vpack.c.bf16 %v1313_v22, %v1309_v54  ;;  %v1338_v54 = vmul.f32 %v3955_v47, %v1334_v10  ;;  %v4551_v43 = vpack.c.bf16 %v3989_v18, %v3983_v63 }
 0x7a3   :  { %v1333_v39 = vsel %vm46_vm4, %v1321_v44, %v1325_v52  ;;  %v1335_v62 = vsel %vm46_vm4, %v1317_v48, %v1321_v44  ;;  %v1330_v6 = vsel %vm46_vm4, %v1323_v45, %v1327_v5  ;;  %v1336_v22 = vsel %vm46_vm4, %v1327_v5, %v1315_v19 }
 0x7a4   :  { %v1343_v14 = vmul.f32 %v3945_v25, %v1333_v39  ;;  %3278 = vmatpush1.bf16.msra.mxu0 %v3277_v42  ;;  %3288 = vmatprep.subr.bf16.mxu1 %v3287_v20  ;;  %v1342_v31 = vmul.f32 %v3955_v47, %v1335_v62  ;;  %v1340_v21 = vmul.f32 %v3963_v32, %v1330_v6  ;;  %v4553_v63 = vmov 0.0  }
 0x7a5   :  { %3280 = vmatprep.subr.bf16.mxu0 %v3279_v9  ;;  %3290 = vmatpush1.bf16.msra.mxu1 %v3289_v49  ;;  %v1341_v23 = vmul.f32 %v3966_v16, %v1336_v22 }
 0x7a6   :  { %v1329_v58 = vpop.permute.xlu0 %1328  ;;  %v3283_v36 = vpack.c.bf16 %v1343_v14, %v1339_v1  ;;  %3292 = vmatprep.subr.bf16.mxu1 %v3291_v33  ;;  %v3285_v4 = vpack.c.bf16 %v1342_v31, %v1338_v54  ;;  %v4552_v33 = vpack.c.bf16 %v4001_v28, %v3987_v40 }
 0x7a7   :  { %v1331_v45 = vsel %vm46_vm4, %v1325_v52, %v1329_v58  ;;  %v1337_v19 = vsel %vm46_vm4, %v1329_v58, %v1317_v48 }
 0x7a8   :  { %v1344_v9 = vmul.f32 %v3963_v32, %v1331_v45  ;;  %v1345_v53 = vmul.f32 %v3966_v16, %v1337_v19  ;;  %3282 = vmatpush1.bf16.msra.mxu0 %v4551_v43 }
 0x7a9   :  { %3284 = vmatprep.subr.bf16.mxu0 %v3283_v36  ;;  %3294 = vmatpush1.bf16.msra.mxu1 %v4552_v33 }
 0x7aa   :  { %v3297_v11 = vpack.c.bf16 %v1344_v9, %v1340_v21  ;;  %v3295_v48 = vpack.c.bf16 %v1345_v53, %v1341_v23 }
 0x7ac   :  { %3286 = vmatpush1.bf16.msra.mxu0 %v3285_v4  ;;  %3296 = vmatprep.subr.bf16.mxu1 %v3295_v48 }
 0x7ad   :  { %1530 = vmatprep.subr.mxu0 %v3885_v50  ;;  %3298 = vmatpush1.bf16.msra.mxu1 %v3297_v11 }
 0x7ae   :  { %1607 = vmatprep.subr.mxu1 %v3894_v38 }
 0x7af   :  { %3207 = vmatmul.mubr.msk.f32.vlgmr.msra.gmra.mrb[10].mxu0 %vm1356_vm8, %v4040_v15 }
 0x7b0   :  { %1531 = vmatpush1.msra.mxu0 %v3873_v37  ;;  %1431 = vmatprep.mubr.f32.mxu0 %v4553_v63 }
 0x7b1   :  { %3209 = vmatmul.mubr.msk.f32.vlgmr.msra.gmra.mrb[10].mxu1 %vm1356_vm8, %v4040_v15 }
 0x7b2   :  { %1608 = vmatpush1.msra.mxu1 %v3888_v34  ;;  %1508 = vmatprep.mubr.f32.mxu1 %v4553_v63 }
 0x7b3   :  { %3208 = vmatmul.mubr.msk.f32.gmra.mrb[12].mxu0 %vm1356_vm8, %v4048_v30  ;;  %v1349_v37 = vpop.permute.xlu1 %1348 }
 0x7b4   :  { %1594 = vmatprep.mubr.f32.mxu0 %v4553_v63 }
 0x7b5   :  { %3210 = vmatmul.mubr.msk.f32.gmra.mrb[12].mxu1 %vm1356_vm8, %v4048_v30 }
 0x7b6   :  { %1671 = vmatprep.mubr.f32.mxu1 %v4553_v63 }
 0x7b7   :  { %3211 = vmatmul.mubr.msk.f32.vlgmr.msra.gmra.mrb[10].mxu0 %vm1525_vm13, %v4053_v12  ;;  %v1354_v50 = vpop.permute.xlu0 %1353  ;;  %v1518_v34 = vpop.permute.xlu1 %1517 }
 0x7b8   :  { %1600 = vmatprep.mubr.f32.mxu0 %v4553_v63  ;;  %v3351_v38 = vadd.f32 %v1518_v34, %v1349_v37 }
 0x7b9   :  { %3213 = vmatmul.mubr.msk.f32.vlgmr.msra.gmra.mrb[10].mxu1 %vm1525_vm13, %v4053_v12 }
 0x7ba   :  { %1677 = vmatprep.mubr.f32.mxu1 %v4553_v63 }
 0x7bb   :  { %3212 = vmatmul.mubr.msk.f32.gmra.mrb[12].mxu0 %vm1525_vm13, %v4060_v35  ;;  %v1523_v40 = vpop.permute.xlu0 %1522 }
 0x7bc   :  { %1856 = vmatprep.mubr.f32.mxu0 %v4553_v63  ;;  %v3355_v12 = vadd.f32 %v1523_v40, %v1354_v50 }
 0x7bd   :  { %3214 = vmatmul.mubr.msk.f32.gmra.mrb[12].mxu1 %vm1525_vm13, %v4060_v35 }
 0x7be   :  { %1933 = vmatprep.mubr.f32.mxu1 %v4553_v63 }
 0x88a   :  { %v1596_v18 = vpop.f32.mrb[10].mxu0 }
 0x88b   :  { %v3352_v28 = vadd.f32 %v3351_v38, %v1596_v18  ;;  %v1598_v15 = vpop.f32.mrb[11].mxu0 }
 0x88c   :  { %v1673_v30 = vpop.f32.mrb[10].mxu1  ;;  %v3354_v20 = vadd.f32 %v3351_v38, %v1598_v15 }
 0x88d   :  { %v1692_v52 = vmax.f32 %v3352_v28, 0.0  ;;  %v3360_v8 = vadd.f32 %v3351_v38, %v1673_v30  ;;  %v1675_v7 = vpop.f32.mrb[11].mxu1 }
 0x88e   :  { %v1602_v42 = vpop.f32.mrb[12].mxu0  ;;  %v1693_v1 = vmax.f32 %v3354_v20, 0.0  ;;  %v3362_v14 = vadd.f32 %v3351_v38, %v1675_v7 }
 0x88f   :  { %v3356_v5 = vadd.f32 %v3355_v12, %v1602_v42  ;;  %1700 = vrot.lane.b32.xlu1 %v1692_v52, %s3440_s27  ;;  %v1604_v35 = vpop.f32.mrb[13].mxu0  ;;  %v1694_v39 = vmax.f32 %v3360_v8, 0.0 }
 0x890   :  { %v1679_v44 = vpop.f32.mrb[12].mxu1  ;;  %v3358_v6 = vadd.f32 %v3355_v12, %v1604_v35  ;;  %v1695_v31 = vmax.f32 %v3362_v14, 0.0 }
 0x891   :  { %v1696_v62 = vmax.f32 %v3356_v5, 0.0  ;;  %v3364_v49 = vadd.f32 %v3355_v12, %v1679_v44  ;;  %v1681_v10 = vpop.f32.mrb[13].mxu1 }
 0x892   :  { %v1697_v58 = vmax.f32 %v3358_v6, 0.0  ;;  %v3366_v36 = vadd.f32 %v3355_v12, %v1681_v10 }
 0x893   :  { %1708 = vrot.lane.b32.xlu1 %v1694_v39, %s3440_s27  ;;  %1702 = vrot.lane.b32.xlu0 %v1696_v62, %s3440_s27  ;;  %v1698_v22 = vmax.f32 %v3364_v49, 0.0 }
 0x894   :  { %v1699_v54 = vmax.f32 %v3366_v36, 0.0 }
 0x897   :  { %1704 = vrot.lane.b32.xlu1 %v1693_v1, %s3440_s27  ;;  %1710 = vrot.lane.b32.xlu0 %v1698_v22, %s3440_s27 }
 0x89b   :  { %1712 = vrot.lane.b32.xlu1 %v1695_v31, %s3440_s27  ;;  %1706 = vrot.lane.b32.xlu0 %v1697_v58, %s3440_s27 }
 0x89f   :  { %1714 = vrot.lane.b32.xlu0 %v1699_v54, %s3440_s27 }
 0x901   :  { %v1701_v45 = vpop.permute.xlu1 %1700 }
 0x905   :  { %v1709_v19 = vpop.permute.xlu1 %1708  ;;  %v1703_v21 = vpop.permute.xlu0 %1702 }
 0x909   :  { %v1705_v23 = vpop.permute.xlu1 %1704  ;;  %v1711_v9 = vpop.permute.xlu0 %1710 }
 0x90a   :  { %v1718_v53 = vsel %vm46_vm4, %v1705_v23, %v1709_v19  ;;  %v1720_v43 = vsel %vm46_vm4, %v1701_v45, %v1705_v23  ;;  %v3174_v23 = vsel %vm59_vm15, 1.0, %v4553_v63 }
 0x90b   :  { %v1724_v4 = vmul.f32 %v3955_v47, %v1720_v43  ;;  %v1725_v11 = vmul.f32 %v3945_v25, %v1718_v53  ;;  %v3173_v53 = vsel %vm58_vm0, 1.0, %v4553_v63 }
 0x90d   :  { %v1732_v33 = vmax.f32 %v1692_v52, %v1724_v4  ;;  %v1713_v48 = vpop.permute.xlu1 %1712  ;;  %v1707_v37 = vpop.permute.xlu0 %1706  ;;  %v1733_v15 = vmax.f32 %v1693_v1, %v1725_v11 }
 0x90e   :  { %v1716_v50 = vsel %vm46_vm4, %v1709_v19, %v1713_v48  ;;  %v1722_v34 = vsel %vm46_vm4, %v1713_v48, %v1701_v45  ;;  %v1719_v38 = vsel %vm46_vm4, %v1707_v37, %v1711_v9  ;;  %v1721_v40 = vsel %vm46_vm4, %v1703_v21, %v1707_v37 }
 0x90f   :  { %v1728_v18 = vmul.f32 %v3955_v47, %v1721_v40  ;;  %v1729_v28 = vmul.f32 %v3945_v25, %v1719_v38  ;;  %1744 = vrot.lane.b32.xlu1 %v1732_v33, %s3441_s12  ;;  %v1726_v30 = vmul.f32 %v3963_v32, %v1716_v50  ;;  %v1727_v12 = vmul.f32 %v3966_v16, %v1722_v34 }
 0x910   :  { %v3175_v50 = vsel %vm60_vm1, 1.0, %v4553_v63  ;;  %v3176_v40 = vsel %vm61_vm5, 1.0, %v4553_v63 }
 0x911   :  { %v1737_v52 = vmax.f32 %v1697_v58, %v1729_v28  ;;  %v1715_v8 = vpop.permute.xlu0 %1714  ;;  %v1736_v7 = vmax.f32 %v1696_v62, %v1728_v18  ;;  %v1734_v10 = vmax.f32 %v1694_v39, %v1726_v30  ;;  %v1735_v62 = vmax.f32 %v1695_v31, %v1727_v12  ;;  %v1741_v39 = vld [vmem:[%s4544_s1 + $0x68] sm:$0xff] }
 0x912   :  { %v1717_v42 = vsel %vm46_vm4, %v1711_v9, %v1715_v8  ;;  %v1723_v5 = vsel %vm46_vm4, %v1715_v8, %v1703_v21 }
 0x913   :  { %v1730_v35 = vmul.f32 %v3963_v32, %v1717_v42  ;;  %v1731_v44 = vmul.f32 %v3966_v16, %v1723_v5  ;;  %1748 = vrot.lane.b32.xlu1 %v1733_v15, %s3441_s12  ;;  %1746 = vrot.lane.b32.xlu0 %v1736_v7, %s3441_s12  ;;  %v4182_v20 = vpack.c.bf16 %v1736_v7, %v1732_v33 }
 0x914   :  { %v4184_v49 = vpack.c.bf16 %v1737_v52, %v1733_v15 }
 0x915   :  { %v1738_v1 = vmax.f32 %v1698_v22, %v1730_v35  ;;  %v1739_v14 = vmax.f32 %v1699_v54, %v1731_v44  ;;  %v1740_v22 = vld [vmem:[%s4544_s1 + $0x60] sm:$0xff] }
 0x916   :  { %3300 = vmatprep.subr.bf16.mxu0 %v4184_v49 }
 0x917   :  { %v4187_v6 = vpack.c.bf16 %v1738_v1, %v1734_v10  ;;  %3302 = vmatpush1.bf16.msra.mxu0 %v4182_v20  ;;  %1752 = vrot.lane.b32.xlu1 %v1734_v10, %s3441_s12  ;;  %v4191_v58 = vpack.c.bf16 %v1739_v14, %v1735_v62 }
 0x918   :  { %1750 = vrot.lane.b32.xlu0 %v1737_v52, %s3441_s12 }
 0x919   :  { %3308 = vmatprep.subr.bf16.mxu1 %v4191_v58 }
 0x91a   :  { %3310 = vmatpush1.bf16.msra.mxu1 %v4187_v6 }
 0x91b   :  { %1756 = vrot.lane.b32.xlu1 %v1735_v62, %s3441_s12 }
 0x91c   :  { %1754 = vrot.lane.b32.xlu0 %v1738_v1, %s3441_s12 }
 0x91f   :  { %1784 = vperm.xlu1 %3402, %v1741_v39  }
 0x920   :  { %1758 = vrot.lane.b32.xlu0 %v1739_v14, %s3441_s12 }
 0x924   :  { %1779 = vperm.xlu0 %3403, %v1740_v22  }
 0x981   :  { %v1745_v31 = vpop.permute.xlu1 %1744 }
 0x985   :  { %v1749_v36 = vpop.permute.xlu1 %1748  ;;  %v1747_v54 = vpop.permute.xlu0 %1746 }
 0x986   :  { %v1765_v43 = vsel %vm58_vm0, %v1745_v31, %v1749_v36 }
 0x987   :  { %v1769_v38 = vmul.f32 %v3173_v53, %v1765_v43 }
 0x989   :  { %v1753_v45 = vpop.permute.xlu1 %1752 }
 0x98a   :  { %v1751_v19 = vpop.permute.xlu0 %1750  ;;  %v1763_v9 = vsel %vm58_vm0, %v1749_v36, %v1753_v45 }
 0x98b   :  { %v1766_v21 = vsel %vm58_vm0, %v1747_v54, %v1751_v19  ;;  %v1770_v37 = vmul.f32 %v3174_v23, %v1763_v9 }
 0x98c   :  { %v1773_v33 = vmul.f32 %v3173_v53, %v1766_v21 }
 0x98d   :  { %v1757_v4 = vpop.permute.xlu1 %1756 }
 0x98e   :  { %v1755_v11 = vpop.permute.xlu0 %1754  ;;  %v1761_v18 = vsel %vm58_vm0, %v1753_v45, %v1757_v4  ;;  %v1767_v28 = vsel %vm58_vm0, %v1757_v4, %v1745_v31  ;;  %v3305_v12 = vpack.c.bf16 %v1773_v33, %v1769_v38  ;;  %v122_v33 = vand.u32 7, %v3517_v17 }
 0x98f   :  { %v1764_v48 = vsel %vm58_vm0, %v1751_v19, %v1755_v11  ;;  %v1771_v7 = vmul.f32 %v3175_v50, %v1761_v18  ;;  %v1772_v42 = vmul.f32 %v3176_v40, %v1767_v28  ;;  %v124_v38 = vand.u32 7, %v3524_v26 }
 0x990   :  { %v1774_v34 = vmul.f32 %v3174_v23, %v1764_v48  ;;  %v125_v48 = vand.u32 7, %v3526_v27  ;;  %vm4251_vm15 = vcmp.eq.s32.totalorder %v122_v33, 0 }
 0x991   :  { %vm4259_vm1 = vcmp.eq.s32.totalorder %v124_v38, 0 }
 0x992   :  { %v1759_v15 = vpop.permute.xlu0 %1758  ;;  %v3303_v30 = vpack.c.bf16 %v1774_v34, %v1770_v37 }
 0x993   :  { %v1762_v52 = vsel %vm58_vm0, %v1755_v11, %v1759_v15  ;;  %v1768_v8 = vsel %vm58_vm0, %v1759_v15, %v1747_v54  ;;  %vm4255_vm0 = vcmp.eq.s32.totalorder %v125_v48, 0 }
 0x994   :  { %v1775_v5 = vmul.f32 %v3175_v50, %v1762_v52  ;;  %v1776_v35 = vmul.f32 %v3176_v40, %v1768_v8  ;;  %3304 = vmatprep.subr.bf16.mxu0 %v3303_v30 }
 0x995   :  { %3306 = vmatpush1.bf16.msra.mxu0 %v3305_v12 }
 0x996   :  { %v3313_v44 = vpack.c.bf16 %v1775_v5, %v1771_v7  ;;  %v3311_v10 = vpack.c.bf16 %v1776_v35, %v1772_v42 }
 0x998   :  { %3215 = vmatmul.mubr.msk.f32.vlgmr.msra.gmra.mrb[14].mxu0 %vm1787_vm6, %v1740_v22  ;;  %3312 = vmatprep.subr.bf16.mxu1 %v3311_v10 }
 0x999   :  { %3314 = vmatpush1.bf16.msra.mxu1 %v3313_v44  ;;  %1862 = vmatprep.mubr.f32.mxu0 %v4553_v63 }
 0x99c   :  { %3216 = vmatmul.mubr.msk.f32.gmra.mrb[16].mxu0 %vm1787_vm6, %v1741_v39  ;;  %3217 = vmatmul.mubr.msk.f32.vlgmr.msra.gmra.mrb[14].mxu1 %vm1787_vm6, %v1740_v22 }
 0x99d   :  { %1939 = vmatprep.mubr.f32.mxu1 %v4553_v63  ;;  %2077 = vmatprep.mubr.f32.mxu0 %v4553_v63 }
 0x99e   :  { %v1785_v14 = vpop.permute.xlu1 %1784 }
 0x9a0   :  { %3218 = vmatmul.mubr.msk.f32.gmra.mrb[16].mxu1 %vm1787_vm6, %v1741_v39  ;;  %v123_v39 = vand.u32 7, %v3522_v24 }
 0x9a1   :  { %2148 = vmatprep.mubr.f32.mxu1 %v4553_v63 }
 0x9a2   :  { %vm4240_vm8 = vcmp.eq.s32.totalorder %v123_v39, 0 }
 0x9a3   :  { %v1780_v43 = vpop.permute.xlu0 %1779 }
 0xa6b   :  { %v1858_v62 = vpop.f32.mrb[14].mxu0 }
 0xa6c   :  { %v1860_v1 = vpop.f32.mrb[15].mxu0  ;;  %v1859_v12 = vadd.f32 %v1858_v62, %v1780_v43 }
 0xa6d   :  { %v1861_v37 = vadd.f32 %v1860_v1, %v1780_v43 }
 0xa6f   :  { %v1864_v31 = vpop.f32.mrb[16].mxu0  ;;  %v1935_v36 = vpop.f32.mrb[14].mxu1 }
 0xa70   :  { %v1865_v54 = vadd.f32 %v1864_v31, %v1785_v14  ;;  %v1866_v45 = vpop.f32.mrb[17].mxu0  ;;  %v1937_v19 = vpop.f32.mrb[15].mxu1  ;;  %v1936_v44 = vadd.f32 %v1935_v36, %v1780_v43  ;;  %v1743_v36 = vld [vmem:[%s4544_s1 + $0x78] sm:$0xff] }
 0xa71   :  { %v1867_v21 = vadd.f32 %v1866_v45, %v1785_v14  ;;  %v1938_v52 = vadd.f32 %v1937_v19, %v1780_v43  ;;  %v1742_v45 = vld [vmem:[%s4544_s1 + $0x70] sm:$0xff] }
 0xa72   :  { %1946 = vrot.lane.b32.xlu1 %v1865_v54, %s3439_s26 }
 0xa73   :  { %1948 = vrot.lane.b32.xlu0 %v1867_v21, %s3439_s26  ;;  %v1941_v22 = vpop.f32.mrb[16].mxu1 }
 0xa74   :  { %v1942_v23 = vadd.f32 %v1941_v22, %v1785_v14  ;;  %v1943_v9 = vpop.f32.mrb[17].mxu1 }
 0xa75   :  { %v1944_v53 = vadd.f32 %v1943_v9, %v1785_v14 }
 0xa76   :  { %1950 = vrot.lane.b32.xlu1 %v1942_v23, %s3439_s26 }
 0xa77   :  { %1952 = vrot.lane.b32.xlu0 %v1944_v53, %s3439_s26 }
 0xae4   :  { %v1947_v4 = vpop.permute.xlu1 %1946 }
 0xae5   :  { %v1949_v50 = vpop.permute.xlu0 %1948 }
 0xae6   :  { %v1956_v34 = vsel %vm1080_vm10, %v1947_v4, %v1949_v50 }
 0xae7   :  { %v1967_v40 = vsel %vm4240_vm8, %v1861_v37, %v1956_v34 }
 0xae8   :  { %v1971_v18 = vmax.f32 %v1967_v40, 0.0  ;;  %v1951_v28 = vpop.permute.xlu1 %1950 }
 0xae9   :  { %v1953_v8 = vpop.permute.xlu0 %1952  ;;  %v1955_v42 = vsel %vm1080_vm10, %v1949_v50, %v1951_v28 }
 0xaea   :  { %v1954_v5 = vsel %vm1080_vm10, %v1951_v28, %v1953_v8  ;;  %v1957_v35 = vsel %vm1080_vm10, %v1953_v8, %v1947_v4  ;;  %1976 = vrot.lane.b32.xlu0 %v1971_v18, %s3439_s26  ;;  %v1968_v31 = vsel %vm4259_vm1, %v1936_v44, %v1955_v42 }
 0xaeb   :  { %v1966_v10 = vsel %vm4251_vm15, %v1859_v12, %v1957_v35  ;;  %v1969_v62 = vsel %vm4255_vm0, %v1938_v52, %v1954_v5  ;;  %v1972_v54 = vmax.f32 %v1968_v31, 0.0 }
 0xaec   :  { %v1970_v1 = vmax.f32 %v1966_v10, 0.0  ;;  %v1973_v14 = vmax.f32 %v1969_v62, 0.0 }
 0xaee   :  { %1974 = vrot.lane.b32.xlu1 %v1970_v1, %s3439_s26  ;;  %1980 = vrot.lane.b32.xlu0 %v1973_v14, %s3439_s26 }
 0xaf2   :  { %1978 = vrot.lane.b32.xlu1 %v1972_v54, %s3439_s26  ;;  %1992 = vrot.lane.b32.xlu0 %v1971_v18, %s3440_s27 }
 0xaf6   :  { %1990 = vrot.lane.b32.xlu1 %v1970_v1, %s3440_s27  ;;  %1996 = vrot.lane.b32.xlu0 %v1973_v14, %s3440_s27 }
 0xafa   :  { %1994 = vrot.lane.b32.xlu1 %v1972_v54, %s3440_s27  ;;  %2306 = vperm.xlu0 %3403, %v1743_v36  }
 0xafe   :  { %2008 = vperm.xlu1 %3402, %v1742_v45  }
 0xb5c   :  { %v1977_v19 = vpop.permute.xlu0 %1976 }
 0xb60   :  { %v1975_v21 = vpop.permute.xlu1 %1974  ;;  %v1981_v22 = vpop.permute.xlu0 %1980 }
 0xb61   :  { %v1984_v23 = vsel %vm1080_vm10, %v1975_v21, %v1977_v19  ;;  %v1985_v9 = vsel %vm1080_vm10, %v1981_v22, %v1975_v21 }
 0xb62   :  { %v1987_v53 = vmul.f32 %v3915_v51, %v1984_v23  ;;  %v1986_v39 = vmul.f32 %v3929_v0, %v1985_v9 }
 0xb64   :  { %v3317_v43 = vpack.c.bf16 %v1970_v1, %v1986_v39  ;;  %v1979_v4 = vpop.permute.xlu1 %1978  ;;  %v1993_v33 = vpop.permute.xlu0 %1992  ;;  %v3315_v48 = vpack.c.bf16 %v1971_v18, %v1987_v53 }
 0xb65   :  { %v1982_v37 = vsel %vm1080_vm10, %v1979_v4, %v1981_v22  ;;  %v1983_v50 = vsel %vm1080_vm10, %v1977_v19, %v1979_v4  ;;  %vm2155_vm10 = vcmask 130048  }
 0xb66   :  { %v1988_v34 = vmul.f32 %v3924_v55, %v1983_v50  ;;  %v1989_v38 = vmul.f32 %v3932_v46, %v1982_v37  ;;  %3316 = vmatprep.subr.bf16.mxu0 %v3315_v48 }
 0xb67   :  { %3318 = vmatpush1.bf16.msra.mxu0 %v3317_v43 }
 0xb68   :  { %v3321_v40 = vpack.c.bf16 %v1972_v54, %v1988_v34  ;;  %v1991_v51 = vpop.permute.xlu1 %1990  ;;  %v1997_v28 = vpop.permute.xlu0 %1996  ;;  %v3319_v0 = vpack.c.bf16 %v1973_v14, %v1989_v38  ;;  %v2321_v34 = vld [vmem:[%s4544_s1 + $0x80] sm:$0xff] }
 0xb69   :  { %v2001_v12 = vsel %vm46_vm4, %v1997_v28, %v1991_v51  ;;  %v2000_v52 = vsel %vm46_vm4, %v1991_v51, %v1993_v33 }
 0xb6a   :  { %v2005_v18 = vmul.f32 %v3966_v16, %v2001_v12  ;;  %3320 = vmatprep.subr.bf16.mxu1 %v3319_v0  ;;  %v2002_v35 = vmul.f32 %v3955_v47, %v2000_v52 }
 0xb6b   :  { %3322 = vmatpush1.bf16.msra.mxu1 %v3321_v40 }
 0xb6c   :  { %v1995_v8 = vpop.permute.xlu1 %1994  ;;  %2088 = vmatprep.subr.mxu1 %v2005_v18 }
 0xb6d   :  { %v1998_v55 = vsel %vm46_vm4, %v1995_v8, %v1997_v28  ;;  %v1999_v46 = vsel %vm46_vm4, %v1993_v33, %v1995_v8 }
 0xb6e   :  { %v2003_v42 = vmul.f32 %v3945_v25, %v1999_v46  ;;  %v2004_v5 = vmul.f32 %v3963_v32, %v1998_v55 }
 0xb70   :  { %2017 = vmatprep.subr.mxu0 %v2003_v42  ;;  %2089 = vmatpush1.msra.mxu1 %v2004_v5 }
 0xb71   :  { %2018 = vmatpush1.msra.mxu0 %v2002_v35  ;;  %3220 = vmatmul.mubr.msk.f32.vlgmr.msra.gmra.mrb[18].mxu1 %vm776_vm7, %v1742_v45 }
 0xb72   :  { %3328 = vmatprep.subr.bf16.mxu1 %v4191_v58  ;;  %3219 = vmatmul.mubr.msk.f32.vlgmr.msra.gmra.mrb[18].mxu0 %vm776_vm7, %v1742_v45 }
 0xb73   :  { %3324 = vmatprep.subr.bf16.mxu0 %v4184_v49  ;;  %3330 = vmatpush1.bf16.msra.mxu1 %v4187_v6 }
 0xb74   :  { %3326 = vmatpush1.bf16.msra.mxu0 %v4182_v20  ;;  %2294 = vmatprep.mubr.f32.mxu1 %v4553_v63 }
 0xb75   :  { %2223 = vmatprep.mubr.f32.mxu0 %v4553_v63 }
 0xb76   :  { %3222 = vmatmul.mubr.msk.f32.vlgmr.msra.gmra.mrb[20].mxu1 %vm2155_vm10, %v1743_v36 }
 0xb77   :  { %3221 = vmatmul.mubr.msk.f32.vlgmr.msra.gmra.mrb[20].mxu0 %vm2155_vm10, %v1743_v36  ;;  %2482 = vmatprep.mubr.f32.mxu1 %v4553_v63 }
 0xb78   :  { %2411 = vmatprep.mubr.f32.mxu0 %v4553_v63 }
 0xb79   :  { %v2307_v6 = vpop.permute.xlu0 %2306 }
 0xb7d   :  { %v2009_v62 = vpop.permute.xlu1 %2008 }
 0xc44   :  { %v2150_v58 = vpop.f32.mrb[18].mxu1 }
 0xc45   :  { %v2079_v44 = vpop.f32.mrb[18].mxu0  ;;  %v2152_v49 = vpop.f32.mrb[19].mxu1  ;;  %v2151_v20 = vadd.f32 %v2150_v58, %v2009_v62 }
 0xc46   :  { %v2081_v10 = vpop.f32.mrb[19].mxu0  ;;  %v2080_v45 = vadd.f32 %v2079_v44, %v2009_v62  ;;  %v2153_v23 = vadd.f32 %v2152_v49, %v2009_v62 }
 0xc47   :  { %v2082_v43 = vadd.f32 %v2081_v10, %v2009_v62 }
 0xc49   :  { %v2296_v1 = vpop.f32.mrb[20].mxu1 }
 0xc4a   :  { %v2303_v14 = vsel %vm4259_vm1, %v2296_v1, 0.0  ;;  %v2225_v31 = vpop.f32.mrb[20].mxu0  ;;  %v2298_v54 = vpop.f32.mrb[21].mxu1 }
 0xc4b   :  { %v2311_v19 = vadd.f32 %v2307_v6, %v2303_v14  ;;  %v2301_v36 = vsel %vm4251_vm15, %v2225_v31, 0.0  ;;  %v2304_v21 = vsel %vm4255_vm0, %v2298_v54, 0.0  ;;  %v2227_v22 = vpop.f32.mrb[21].mxu0 }
 0xc4c   :  { %v2309_v9 = vadd.f32 %v2307_v6, %v2301_v36  ;;  %v2312_v53 = vadd.f32 %v2307_v6, %v2304_v21  ;;  %v2302_v39 = vsel %vm4240_vm8, %v2227_v22, 0.0  ;;  %v114_v21 = vand.u32 3, %v3517_v17  ;;  %v2903_v36 = vld [vmem:[%s4544_s1 + $0x98] sm:$0x3] }
 0xc4d   :  { %v2315_v7 = vadd.f32 %v2311_v19, %v2151_v20  ;;  %v2310_v4 = vadd.f32 %v2307_v6, %v2302_v39  ;;  %v117_v22 = vand.u32 3, %v3526_v27 }
 0xc4e   :  { %v2313_v33 = vadd.f32 %v2309_v9, %v2080_v45  ;;  %v2316_v48 = vadd.f32 %v2312_v53, %v2153_v23  ;;  %v115_v45 = vand.u32 3, %v3522_v24  ;;  %v116_v53 = vand.u32 3, %v3524_v26 }
 0xc4f   :  { %v2314_v37 = vadd.f32 %v2310_v4, %v2082_v43  ;;  %v4341_v30 = vmax.f32 %v2315_v7, 0.0  ;;  %vm4392_vm5 = vcmp.eq.s32.totalorder %v117_v22, 0 }
 0xc50   :  { %v4333_v50 = vmax.f32 %v2313_v33, 0.0  ;;  %v4343_v11 = vmax.f32 %v2316_v48, 0.0  ;;  %vm4377_vm7 = vcmp.eq.s32.totalorder %v115_v45, 0  ;;  %vm4396_vm6 = vcmp.eq.s32.totalorder %v116_v53, 0 }
 0xc51   :  { %v4335_v15 = vmax.f32 %v2314_v37, 0.0 }
 0xc52   :  { %2324 = vrot.lane.b32.xlu1 %v4333_v50, %s3440_s27 }
 0xc53   :  { %2326 = vrot.lane.b32.xlu0 %v4335_v15, %s3440_s27 }
 0xc56   :  { %2328 = vrot.lane.b32.xlu1 %v4341_v30, %s3440_s27 }
 0xc57   :  { %2330 = vrot.lane.b32.xlu0 %v4343_v11, %s3440_s27 }
 0xc5a   :  { %2342 = vperm.xlu1 %3402, %v2321_v34  }
 0xcc4   :  { %v2325_v38 = vpop.permute.xlu1 %2324 }
 0xcc5   :  { %v2327_v40 = vpop.permute.xlu0 %2326 }
 0xcc6   :  { %v2334_v51 = vsel %vm46_vm4, %v2325_v38, %v2327_v40 }
 0xcc7   :  { %v2336_v0 = vmul.f32 %v3955_v47, %v2334_v51 }
 0xcc8   :  { %v2329_v28 = vpop.permute.xlu1 %2328 }
 0xcc9   :  { %v2333_v12 = vsel %vm46_vm4, %v2327_v40, %v2329_v28  ;;  %v2331_v18 = vpop.permute.xlu0 %2330  ;;  %v3333_v47 = vpack.c.bf16 %v2336_v0, %v4333_v50 }
 0xcca   :  { %v2337_v52 = vmul.f32 %v3945_v25, %v2333_v12  ;;  %v2332_v8 = vsel %vm46_vm4, %v2329_v28, %v2331_v18  ;;  %v2335_v55 = vsel %vm46_vm4, %v2331_v18, %v2325_v38  ;;  %vm4388_vm4 = vcmp.eq.s32.totalorder %v114_v21, 0 }
 0xccb   :  { %v2338_v46 = vmul.f32 %v3963_v32, %v2332_v8  ;;  %v2339_v42 = vmul.f32 %v3966_v16, %v2335_v55  ;;  %v2323_v8 = vld [vmem:[%s4544_s1 + $0x90] sm:$0xf]  ;;  %v2322_v55 = vld [vmem:[%s4544_s1 + $0x88] sm:$0xf]  ;;  %s3443_s1 = smov [#allocation2]  }
 0xccc   :  { %v3331_v5 = vpack.c.bf16 %v2337_v52, %v4335_v15 }
 0xccd   :  { %v3337_v35 = vpack.c.bf16 %v2338_v46, %v4341_v30  ;;  %v3335_v58 = vpack.c.bf16 %v2339_v42, %v4343_v11 }
 0xcce   :  { %3332 = vmatprep.subr.bf16.mxu0 %v3331_v5 }
 0xccf   :  { %3334 = vmatpush1.bf16.msra.mxu0 %v3333_v47  ;;  %3336 = vmatprep.subr.bf16.mxu1 %v3335_v58 }
 0xcd0   :  { %3338 = vmatpush1.bf16.msra.mxu1 %v3337_v35 }
 0xcd2   :  { %3223 = vmatmul.mubr.msk.f32.vlgmr.msra.gmra.mrb[22].mxu0 %vm2155_vm10, %v2321_v34 }
 0xcd3   :  { %3224 = vmatmul.mubr.msk.f32.vlgmr.msra.gmra.mrb[22].mxu1 %vm2155_vm10, %v2321_v34  ;;  %2660 = vmatprep.mubr.f32.mxu0 %v4553_v63 }
 0xcd4   :  { %2731 = vmatprep.mubr.f32.mxu1 %v4553_v63 }
 0xcd9   :  { %v2343_v25 = vpop.permute.xlu1 %2342 }
 0xda5   :  { %v2413_v32 = vpop.f32.mrb[22].mxu0 }
 0xda6   :  { %v2414_v16 = vadd.f32 %v2413_v32, %v2343_v25  ;;  %v2415_v44 = vpop.f32.mrb[23].mxu0  ;;  %v2484_v49 = vpop.f32.mrb[22].mxu1 }
 0xda7   :  { %v2416_v10 = vadd.f32 %v2415_v44, %v2343_v25  ;;  %v2486_v6 = vpop.f32.mrb[23].mxu1  ;;  %v2485_v1 = vadd.f32 %v2484_v49, %v2343_v25 }
 0xda8   :  { %v2493_v62 = vrot.slane %v2414_v16, 4  ;;  %v2487_v14 = vadd.f32 %v2486_v6, %v2343_v25 }
 0xda9   :  { %v2494_v20 = vrot.slane %v2416_v10, 4  ;;  %v2495_v31 = vrot.slane %v2485_v1, 4 }
 0xdaa   :  { %2501 = vrot.lane.b32.xlu0 %v2493_v62, %s3436_s18  ;;  %v2496_v54 = vrot.slane %v2487_v14, 4 }
 0xdab   :  { %2503 = vrot.lane.b32.xlu1 %v2494_v20, %s3436_s18 }
 0xdae   :  { %2505 = vrot.lane.b32.xlu0 %v2495_v31, %s3436_s18 }
 0xdaf   :  { %2507 = vrot.lane.b32.xlu1 %v2496_v54, %s3436_s18 }
 0xe1c   :  { %v2502_v19 = vpop.permute.xlu0 %2501 }
 0xe1d   :  { %v2504_v23 = vpop.permute.xlu1 %2503 }
 0xe1e   :  { %v2511_v9 = vsel %vm532_vm14, %v2502_v19, %v2504_v23 }
 0xe1f   :  { %v2522_v39 = vsel %vm4377_vm7, %v2416_v10, %v2511_v9 }
 0xe20   :  { %v2526_v43 = vmax.f32 %v2522_v39, 0.0  ;;  %v2506_v7 = vpop.permute.xlu0 %2505 }
 0xe21   :  { %v2508_v48 = vpop.permute.xlu1 %2507  ;;  %v2510_v34 = vsel %vm532_vm14, %v2504_v23, %v2506_v7 }
 0xe22   :  { %v2509_v38 = vsel %vm532_vm14, %v2506_v7, %v2508_v48  ;;  %v2512_v40 = vsel %vm532_vm14, %v2508_v48, %v2502_v19  ;;  %2531 = vrot.lane.b32.xlu1 %v2526_v43, %s3436_s18  ;;  %v2523_v18 = vsel %vm4396_vm6, %v2485_v1, %v2510_v34  ;;  %v2566_v54 = vrot.slane %v2526_v43, 4 }
 0xe23   :  { %v2521_v51 = vsel %vm4388_vm4, %v2414_v16, %v2512_v40  ;;  %v2524_v28 = vsel %vm4392_vm5, %v2487_v14, %v2509_v38  ;;  %v2527_v52 = vmax.f32 %v2523_v18, 0.0 }
 0xe24   :  { %v2525_v0 = vmax.f32 %v2521_v51, 0.0  ;;  %v2528_v12 = vmax.f32 %v2524_v28, 0.0 }
 0xe25   :  { %v2567_v22 = vrot.slane %v2527_v52, 4 }
 0xe26   :  { %2529 = vrot.lane.b32.xlu0 %v2525_v0, %s3436_s18  ;;  %2535 = vrot.lane.b32.xlu1 %v2528_v12, %s3436_s18  ;;  %v2568_v10 = vrot.slane %v2528_v12, 4  ;;  %v2565_v39 = vrot.slane %v2525_v0, 4 }
 0xe2a   :  { %2533 = vrot.lane.b32.xlu0 %v2527_v52, %s3436_s18  ;;  %2547 = vrot.lane.b32.xlu1 %v2526_v43, %s3437_s19 }
 0xe2e   :  { %2545 = vrot.lane.b32.xlu0 %v2525_v0, %s3437_s19  ;;  %2551 = vrot.lane.b32.xlu1 %v2528_v12, %s3437_s19 }
 0xe32   :  { %2549 = vrot.lane.b32.xlu0 %v2527_v52, %s3437_s19  ;;  %2888 = vperm.xlu1 %3402, %v2323_v8  }
 0xe36   :  { %2579 = vperm.xlu0 %3403, %v2322_v55  }
 0xe94   :  { %v2532_v46 = vpop.permute.xlu1 %2531 }
 0xe98   :  { %v2536_v42 = vpop.permute.xlu1 %2535  ;;  %v2530_v5 = vpop.permute.xlu0 %2529 }
 0xe99   :  { %v2539_v32 = vsel %vm532_vm14, %v2530_v5, %v2532_v46  ;;  %v2540_v6 = vsel %vm532_vm14, %v2536_v42, %v2530_v5 }
 0xe9a   :  { %v2542_v20 = vmul.f32 %v3718_v2, %v2539_v32  ;;  %v2541_v45 = vmul.f32 %v3726_v57, %v2540_v6 }
 0xe9c   :  { %v2548_v47 = vpop.permute.xlu1 %2547  ;;  %v2534_v35 = vpop.permute.xlu0 %2533  ;;  %v2574_v57 = vsel %vm309_vm9, %v2542_v20, %v2566_v54  ;;  %v2573_v7 = vsel %vm309_vm9, %v2541_v45, %v2565_v39 }
 0xe9d   :  { %v2537_v58 = vsel %vm532_vm14, %v2534_v35, %v2536_v42  ;;  %v2538_v16 = vsel %vm532_vm14, %v2532_v46, %v2534_v35 }
 0xe9e   :  { %v2544_v25 = vmul.f32 %v3731_v59, %v2537_v58  ;;  %v2543_v14 = vmul.f32 %v3723_v56, %v2538_v16 }
 0xea0   :  { %v2552_v44 = vpop.permute.xlu1 %2551  ;;  %v2546_v49 = vpop.permute.xlu0 %2545  ;;  %v2576_v31 = vsel %vm309_vm9, %v2544_v25, %v2568_v10  ;;  %v2575_v43 = vsel %vm309_vm9, %v2543_v14, %v2567_v22 }
 0xea1   :  { %v2556_v62 = vsel %vm34_vm3, %v2552_v44, %v2546_v49  ;;  %v2555_v1 = vsel %vm34_vm3, %v2546_v49, %v2548_v47 }
 0xea2   :  { %v2560_v59 = vmul.f32 %v3763_v13, %v2556_v62  ;;  %v2557_v23 = vmul.f32 %v3736_v60, %v2555_v1 }
 0xea4   :  { %v3345_v19 = vpack.c.bf16 %v2560_v59, %v2576_v31  ;;  %v2550_v21 = vpop.permute.xlu0 %2549  ;;  %v3342_v38 = vpack.c.bf16 %v2557_v23, %v2573_v7 }
 0xea5   :  { %v2553_v9 = vsel %vm34_vm3, %v2550_v21, %v2552_v44  ;;  %v2554_v53 = vsel %vm34_vm3, %v2548_v47, %v2550_v21 }
 0xea6   :  { %v2558_v2 = vmul.f32 %v3739_v61, %v2554_v53  ;;  %v2559_v56 = vmul.f32 %v3757_v29, %v2553_v9  ;;  %3347 = vmatprep.subr.msk.bf16.mxu1 %vm3637_vm11, %v3345_v19 }
 0xea8   :  { %v3339_v48 = vpack.c.bf16 %v2558_v2, %v2574_v57  ;;  %v3348_v34 = vpack.c.bf16 %v2559_v56, %v2575_v43 }
 0xeaa   :  { %3341 = vmatprep.subr.msk.bf16.mxu0 %vm3637_vm11, %v3339_v48  ;;  %3350 = vmatpush1.bf16.msk.msra.mxu1 %vm3637_vm11, %v3348_v34 }
 0xeab   :  { %3344 = vmatpush1.bf16.msk.msra.mxu0 %vm3637_vm11, %v3342_v38  ;;  %2812 = vmatprep.subr.mxu1 %v4343_v11 }
 0xeac   :  { %2741 = vmatprep.subr.mxu0 %v4335_v15 }
 0xead   :  { %3230 = vmatmul.mubr.msk.f32.vlgmr.msra.gmra.mrb[24].mxu1 %vm319_vm12, %v2322_v55 }
 0xeae   :  { %3227 = vmatmul.mubr.msk.f32.vlgmr.msra.gmra.mrb[24].mxu0 %vm319_vm12, %v2322_v55  ;;  %2813 = vmatpush1.msra.mxu1 %v4341_v30 }
 0xeaf   :  { %2742 = vmatpush1.msra.mxu0 %v4333_v50  ;;  %2876 = vmatprep.mubr.f32.mxu1 %v4553_v63 }
 0xeb0   :  { %2805 = vmatprep.mubr.f32.mxu0 %v4553_v63 }
 0xeb1   :  { %3232 = vmatmul.mubr.msk.f32.vlgmr.msra.gmra.mrb[26].mxu1 %vm1525_vm13, %v2323_v8  ;;  %v2889_v51 = vpop.permute.xlu1 %2888 }
 0xeb2   :  { %3231 = vmatmul.mubr.msk.f32.vlgmr.msra.gmra.mrb[26].mxu0 %vm1525_vm13, %v2323_v8  ;;  %3078 = vmatprep.mubr.f32.mxu1 %v4553_v63 }
 0xeb3   :  { %3007 = vmatprep.mubr.f32.mxu0 %v4553_v63 }
 0xeb5   :  { %v2580_v30 = vpop.permute.xlu0 %2579 }
 0xf80   :  { %v2733_v41 = vpop.f32.mrb[24].mxu1 }
 0xf81   :  { %v2662_v15 = vpop.f32.mrb[24].mxu0  ;;  %v2735_v11 = vpop.f32.mrb[25].mxu1  ;;  %v2734_v50 = vadd.f32 %v2733_v41, %v2580_v30 }
 0xf82   :  { %v2664_v40 = vpop.f32.mrb[25].mxu0  ;;  %v2663_v52 = vadd.f32 %v2662_v15, %v2580_v30  ;;  %v2736_v42 = vadd.f32 %v2735_v11, %v2580_v30 }
 0xf83   :  { %v2665_v58 = vadd.f32 %v2664_v40, %v2580_v30  ;;  %v3442_v30 = vmov 1966171168  }
 0xf84   :  { %v2878_v28 = vpop.f32.mrb[26].mxu1 }
 0xf85   :  { %v2885_v0 = vsel %vm4396_vm6, %v2878_v28, 0.0  ;;  %v2807_v12 = vpop.f32.mrb[26].mxu0  ;;  %v2880_v18 = vpop.f32.mrb[27].mxu1  ;;  %v3120_v28 = vunpack.c.l.s4 %v3442_v30 }
 0xf86   :  { %v2893_v55 = vadd.f32 %v2889_v51, %v2885_v0  ;;  %v2883_v8 = vsel %vm4388_vm4, %v2807_v12, 0.0  ;;  %v2886_v63 = vsel %vm4392_vm5, %v2880_v18, 0.0  ;;  %v2809_v46 = vpop.f32.mrb[27].mxu0  ;;  %v107_v12 = vand.u32 1, %v3522_v24 }
 0xf87   :  { %v2891_v5 = vadd.f32 %v2889_v51, %v2883_v8  ;;  %v2894_v47 = vadd.f32 %v2889_v51, %v2886_v63  ;;  %v2884_v35 = vsel %vm4377_vm7, %v2809_v46, 0.0  ;;  %v106_v18 = vand.u32 1, %v3517_v17 }
 0xf88   :  { %v2897_v37 = vadd.f32 %v2893_v55, %v2734_v50  ;;  %v2892_v25 = vadd.f32 %v2889_v51, %v2884_v35  ;;  %v108_v50 = vand.u32 1, %v3524_v26  ;;  %v3121_v8 = vunpack.c.0.s8 %v3120_v28 }
 0xf89   :  { %v2895_v32 = vadd.f32 %v2891_v5, %v2663_v52  ;;  %v2898_v16 = vadd.f32 %v2894_v47, %v2736_v42  ;;  %v109_v52 = vand.u32 1, %v3526_v27  ;;  %vm111_vm11 = vcmp.eq.s32.totalorder %v107_v12, 0 }
 0xf8a   :  { %v2896_v44 = vadd.f32 %v2892_v25, %v2665_v58  ;;  %v2901_v4 = vmax.f32 %v2897_v37, 0.0  ;;  %vm110_vm12 = vcmp.eq.s32.totalorder %v106_v18, 0  ;;  %v3124_v5 = vsub.s32 %v3121_v8, %v3464_v3 }
 0xf8b   :  { %v2899_v49 = vmax.f32 %v2895_v32, 0.0  ;;  %v2902_v33 = vmax.f32 %v2898_v16, 0.0  ;;  %vm113_vm14 = vcmp.eq.s32.totalorder %v109_v52, 0 }
 0xf8c   :  { %v2900_v10 = vmax.f32 %v2896_v44, 0.0 }
 0xf8d   :  { %2904 = vrot.lane.b32.xlu0 %v2899_v49, %s3437_s19 }
 0xf8e   :  { %2906 = vrot.lane.b32.xlu1 %v2900_v10, %s3437_s19 }
 0xf91   :  { %2908 = vrot.lane.b32.xlu0 %v2901_v4, %s3437_s19 }
 0xf92   :  { %2910 = vrot.lane.b32.xlu1 %v2902_v33, %s3437_s19 }
 0xf95   :  { %2938 = vperm.xlu0 %3403, %v2903_v36  }
 0xfff   :  { %v2905_v6 = vpop.permute.xlu0 %2904 }
0x1000   :  { %v2907_v62 = vpop.permute.xlu1 %2906 }
0x1001   :  { %v2914_v1 = vsel %vm34_vm3, %v2905_v6, %v2907_v62 }
0x1002   :  { %v2916_v59 = vmul.f32 %v3736_v60, %v2914_v1 }
0x1003   :  { %v2909_v20 = vpop.permute.xlu0 %2908 }
0x1004   :  { %v2913_v14 = vsel %vm34_vm3, %v2907_v62, %v2909_v20  ;;  %v2911_v31 = vpop.permute.xlu1 %2910  ;;  %v2924_v21 = vrot.slane %v2916_v59, 4 }
0x1005   :  { %v2917_v54 = vmul.f32 %v3739_v61, %v2913_v14  ;;  %v2912_v45 = vsel %vm34_vm3, %v2909_v20, %v2911_v31  ;;  %v2915_v19 = vsel %vm34_vm3, %v2911_v31, %v2905_v6 }
0x1006   :  { %v2918_v22 = vmul.f32 %v3757_v29, %v2912_v45  ;;  %v2919_v23 = vmul.f32 %v3763_v13, %v2915_v19  ;;  %v2932_v2 = vsel %vm309_vm9, %v2899_v49, %v2924_v21 }
0x1007   :  { %v2925_v9 = vrot.slane %v2917_v54, 4 }
0x1008   :  { %v2926_v60 = vrot.slane %v2918_v22, 4  ;;  %v2927_v53 = vrot.slane %v2919_v23, 4 }
0x1009   :  { %v2933_v39 = vsel %vm309_vm9, %v2900_v10, %v2925_v9 }
0x100a   :  { %2943 = vmatprep.subr.mxu0 %v2933_v39  ;;  %v2935_v61 = vsel %vm309_vm9, %v2902_v33, %v2927_v53  ;;  %v2934_v56 = vsel %vm309_vm9, %v2901_v4, %v2926_v60  ;;  %vm4515_vm9 = vcmp.eq.s32.totalorder %v108_v50, 0  ;;  %v4572_v4 = vlaneseq }
0x100b   :  { %2944 = vmatpush1.msra.mxu0 %v2932_v2  ;;  %3014 = vmatprep.subr.mxu1 %v2935_v61 }
0x100c   :  { %3233 = vmatmul.mubr.msk.f32.vlgmr.msra.gmra.mrb[28].mxu0 %vm1525_vm13, %v2903_v36  ;;  %3015 = vmatpush1.msra.mxu1 %v2934_v56  ;;  %vm3144_vm3 = vcmp.lt.s32.totalorder %v4572_v4, 512 }
0x100d   :  { %3234 = vmatmul.mubr.msk.f32.vlgmr.msra.gmra.mrb[28].mxu1 %vm1525_vm13, %v2903_v36 }
0x1014   :  { %v2939_v29 = vpop.permute.xlu0 %2938 }
0x10df   :  { %v3009_v13 = vpop.f32.mrb[28].mxu0 }
0x10e0   :  { %v3010_v57 = vadd.f32 %v3009_v13, %v2939_v29  ;;  %v3011_v43 = vpop.f32.mrb[29].mxu0  ;;  %v3080_v7 = vpop.f32.mrb[28].mxu1 }
0x10e1   :  { %v3012_v48 = vadd.f32 %v3011_v43, %v2939_v29  ;;  %v3082_v34 = vpop.f32.mrb[29].mxu1  ;;  %v3081_v41 = vadd.f32 %v3080_v7, %v2939_v29 }
0x10e2   :  { %v3089_v38 = vrot.slane %v3010_v57, 1  ;;  %v3083_v11 = vadd.f32 %v3082_v34, %v2939_v29 }
0x10e3   :  { %v3090_v15 = vrot.slane %v3012_v48, 1  ;;  %v3091_v40 = vrot.slane %v3081_v41, 1 }
0x10e4   :  { %3097 = vrot.lane.b32.xlu1 %v3089_v38, %s3432_s0  ;;  %v3092_v51 = vrot.slane %v3083_v11, 1 }
0x10e5   :  { %3099 = vrot.lane.b32.xlu0 %v3090_v15, %s3432_s0 }
0x10e8   :  { %3101 = vrot.lane.b32.xlu1 %v3091_v40, %s3432_s0 }
0x10e9   :  { %3103 = vrot.lane.b32.xlu0 %v3092_v51, %s3432_s0  ;;  %s3153_s0 = sshll.u32 %s3443_s1, 4  ;;  %s3154_s0 = int_to_ptr.vmem [resolvable:$true] %s3153_s0 }
0x10ea   :  { %s3404_s19 = scalar_lea.vmem %s3154_s0, 64  ;;  %p3409_p1 = scmp.lt.s32.totalorder %s3154_s0, %s3154_s0 }
0x10eb   :  { %p3405_p0 = scmp.ne.s32.totalorder %s3154_s0, %s3404_s19  ;;  %p3410_p2 = scmp.lt.s32.totalorder %s3404_s19, %s3404_s19 }
0x10ed   :  { %p3411_p3 = por %p3410_p2, %p3409_p1 }
0x10ef   :  { %p3412_p4 = pnand %p3411_p3, %p3405_p0 }
0x1156   :  { %v3098_v0 = vpop.permute.xlu1 %3097 }
0x1157   :  { %v3100_v55 = vpop.permute.xlu0 %3099 }
0x1158   :  { %v3107_v46 = vsel %vm162_vm2, %v3098_v0, %v3100_v55 }
0x1159   :  { %v3110_v58 = vsel %vm111_vm11, %v3012_v48, %v3107_v46 }
0x115a   :  { %v3102_v42 = vpop.permute.xlu1 %3101 }
0x115b   :  { %v3106_v24 = vsel %vm162_vm2, %v3100_v55, %v3102_v42  ;;  %v3104_v26 = vpop.permute.xlu0 %3103 }
0x115c   :  { %v3111_v27 = vsel %vm4515_vm9, %v3081_v41, %v3106_v24  ;;  %v3105_v47 = vsel %vm162_vm2, %v3102_v42, %v3104_v26  ;;  %v3108_v35 = vsel %vm162_vm2, %v3104_v26, %v3098_v0 }
0x115d   :  { %v3109_v37 = vsel %vm110_vm12, %v3010_v57, %v3108_v35  ;;  %v3112_v25 = vsel %vm113_vm14, %v3083_v11, %v3105_v47 }
0x115e   :  { %v3117_v32 = vcombine.low %v3109_v37, %v3110_v58  ;;  %v3118_v16 = vcombine.low %v3111_v27, %v3112_v25 }
0x1160   :  { %v3125_v44 = vrot.slane %v3117_v32, %v3124_v5  ;;  %v3132_v49 = vrot.slane %v3118_v16, %v3124_v5 }
0x1162   :  { %v3133_v10 = vcombine.low %v3125_v44, %v3132_v49 }
0x1164   :  { %v3140_v33 = vrot.slane %v3133_v10, %v3124_v5 }
0x1166   :  { %3146 = vst.msk [vmem:[#allocation2] sm:$0xf] %vm3144_vm3, %v3140_v33 }
0x1167   :  { %3415 = shalt.err (!%p3412_p4)
}
0x1168   :  { %s3416_s4 = scalar_lea.hbm %s4545_s2, 64 }
0x1169   :  { %p3417_p5 = scmp.ne.s32.totalorder %s4545_s2, %s3416_s4  ;;  %p3420_p6 = scmp.lt.u32.totalorder %s3416_s4, %s4545_s2 }
0x116b   :  { %p3422_p7 = pnand %p3420_p6, %p3417_p5 }
0x116d   :  { %3425 = shalt.err (!%p3422_p7)
}
0x116e   :  { %3156 = dma.vmem_to_hbm [thread:$0]  %s3154_s0, 64, %s4545_s2, [#allocation3]  }
0x116f   :  { %3426 = dma.done.wait [#allocation3], 64  }
0x1170   :  { %3427 = vsyncadd [#allocation3], 4294967232 }
0x1171   :  { %3160 = vsyncpa [#allocation3], 1 }

</bundles_post_ra>
